<compile_context>
chip_gen: v7x
topology: tpu7x:2x2x1
jax: 0.10.0
libtpu: 0.0.40
codegen_flags: <defaults>
</compile_context>

<pallas_src>
import functools

import jax
import jax.numpy as jnp
import numpy as np
from jax import lax
from jax.experimental import pallas as pl
from jax.experimental.pallas import tpu as pltpu


def _round_up(x, m):
    return ((x + m - 1) // m) * m


def _make_kernel(hw, wp2, qt, win):
    """Kernel factory closing over the static flat-shift geometry.

    hw  = (h+2)*(w+2)  flat stride of one t-plane
    wp2 = w+2          flat stride of one row
    qt  = output lanes per tile (multiple of 128)
    win = input window lanes per tile (qt + halo, multiple of 128)
    """

    def kernel(x_ref, w_ref, o_ref, stk_ref):
        # x_ref:   (1, cx, win)      bf16  zero-haloed flattened input window
        # w_ref:   (9, cout, 3*cin)  bf16  per-(kt,kh) fused LHS (kw folded in K)
        # o_ref:   (1, cout, qt)     f32   conv(channels+RSS); bias/residual are
        #                                  added in f32 outside the kernel
        # stk_ref: (3*cin, win)      bf16  kw-stacked [channels ; RSS] buffer
        cout = o_ref.shape[1]
        cx = x_ref.shape[1]

        x = x_ref[0]                                       # (cx, win) bf16
        xf = x.astype(jnp.float32)
        # RSS over the 2c real/imag channels; the zero halo / slack lanes give
        # rss = 0, matching the reference's zero-padded conv of its RSS channel.
        rss = jnp.sqrt(jnp.sum(xf * xf, axis=0, keepdims=True))   # (1, win) f32
        rss_bf = rss.astype(jnp.bfloat16)

        # Build the kw-stack: rows [k*cin : (k+1)*cin] hold [channels ; RSS]
        # shifted left by k lanes (k == kw).  Channels stay bf16 (no f32 round
        # trip).  A 2-lane zero tail keeps every piece full width; those tail
        # lanes are never read (max read lane = qt + max_shift - 3 <= win - 3).
        xpad = jnp.concatenate(
            [x, jnp.zeros((cx, 2), jnp.bfloat16)], axis=1)          # (cx, win+2)
        rpad = jnp.concatenate(
            [rss_bf, jnp.zeros((1, 2), jnp.bfloat16)], axis=1)      # (1, win+2)
        pieces = []
        for k in range(3):
            pieces.append(xpad[:, k:k + win])
            pieces.append(rpad[:, k:k + win])
        stk_ref[...] = jnp.concatenate(pieces, axis=0)              # (3*cin, win)

        # 9 MXU dots (one per (kt, kh)), K = 3*cin, all shifts compile-time
        # constants.  One independent f32 accumulator per kt plane.
        accs = [jnp.zeros((cout, qt), jnp.float32) for _ in range(3)]
        for kt in range(3):
            for kh in range(3):
                base = kt * hw + kh * wp2                 # static lane offset
                rhs = stk_ref[:, base:base + qt]          # (3*cin, qt) bf16
                lhs = w_ref[kt * 3 + kh]                  # (cout, 3*cin) bf16
                accs[kt] = accs[kt] + jnp.dot(
                    lhs, rhs, preferred_element_type=jnp.float32)

        o_ref[0] = accs[0] + accs[1] + accs[2]

    return kernel


def _conv_rss_flat(x_chunks, w_lhs, *, bp, n_q, qt, win, hw, wp2):
    """x_chunks: (bp*n_q, cx, win) bf16 overlapping flat windows.
    w_lhs: (9, cout, 3*cin) bf16.  Returns (bp, cout, n_q*qt) f32: the
    zero-padded 3x3x3 conv of [channels ; RSS] (no bias, no residual)."""
    _, cx, _ = x_chunks.shape
    nine, cout, k3 = w_lhs.shape

    return pl.pallas_call(
        _make_kernel(hw, wp2, qt, win),
        out_shape=jax.ShapeDtypeStruct((bp, cout, n_q * qt), jnp.float32),
        grid=(bp, n_q),
        in_specs=[
            pl.BlockSpec((1, cx, win), lambda b, j: (b * n_q + j, 0, 0)),
            pl.BlockSpec((nine, cout, k3), lambda b, j: (0, 0, 0)),
        ],
        out_specs=pl.BlockSpec((1, cout, qt), lambda b, j: (b, 0, j)),
        scratch_shapes=[pltpu.VMEM((k3, win), jnp.bfloat16)],
        compiler_params=pltpu.CompilerParams(
            dimension_semantics=("parallel", "parallel"),
            vmem_limit_bytes=32 * 1024 * 1024),
    )(x_chunks, w_lhs)


def cnn_wrapper_forward(x, w_dhwio, bias, min_t=4, q_tile=512):
    """Pallas-backed CNNWrapper.forward.  x: (b, c, z, t, h, w) complex64.
    Returns (complex output of same shape, h=None)."""
    b, c, z, t, h, w = x.shape
    cx = 2 * c                    # real/imag channels in '(r c)' order
    cin = cx + 1                  # + RSS channel
    cout = cx
    assert w_dhwio.shape == (3, 3, 3, cin, cout)
    bz = b * z

    # ---- before(): c2r + rearrange to (b z) (r c) t x y, replicate-pad t ----
    # Cast to bf16 BEFORE the big transpose/pad/flatten so the wrapper-side
    # relayout moves half the HBM bytes; the residual is added against the
    # untouched complex x in f32 at the end.
    xri = jnp.stack([jnp.real(x), jnp.imag(x)], axis=0).astype(jnp.bfloat16)
    xch = jnp.transpose(xri, (1, 3, 0, 2, 4, 5, 6)).reshape(bz, cx, t, h, w)
    if t < min_t:
        # faithful to the reference's walrus bug: pad amount = min_t - 1
        xch = jnp.pad(xch, ((0, 0), (0, 0), (0, min_t - 1), (0, 0), (0, 0)),
                      mode="edge")
    tq = xch.shape[2]

    # ---- lane-dense flattened layout + overlapping QT-chunk windows ----
    hp2, wp2 = h + 2, w + 2
    hw = hp2 * wp2
    l_flat = (tq + 2) * hw                     # zero-haloed flat length
    q_total = tq * hw                          # needed output flat length
    qt = max(128, min(_round_up(q_tile, 128), _round_up(q_total, 128)))
    n_q = -(-q_total // qt)
    max_shift = 2 * hw + 2 * wp2 + 2
    win = qt + _round_up(max_shift, 128)       # per-chunk input window (lanes)
    l_src = (n_q - 1) * qt + win

    xp = jnp.pad(xch, ((0, 0), (0, 0), (1, 1), (1, 1), (1, 1)))   # zero halo
    x_flat = jnp.pad(xp.reshape(bz, cx, l_flat),
                     ((0, 0), (0, 0), (0, l_src - l_flat)))
    # Overlapping windows: the halo is duplicated host-side so every grid step
    # is a plain rectangular block and per-step VMEM stays O(qt) (v7x item).
    x_chunks = jnp.stack(
        [lax.slice_in_dim(x_flat, j * qt, j * qt + win, axis=2)
         for j in range(n_q)], axis=1).reshape(bz * n_q, cx, win)

    # ---- per-(kt,kh) fused LHS: (9, cout, 3*cin); kw folded along K ----
    w_t = jnp.transpose(w_dhwio, (0, 1, 2, 4, 3))          # (kt,kh,kw,cout,cin)
    w_lhs = jnp.transpose(w_t, (0, 1, 3, 2, 4)).reshape(9, cout, 3 * cin)
    w_lhs = w_lhs.astype(jnp.bfloat16)

    out_flat = _conv_rss_flat(x_chunks, w_lhs, bp=bz, n_q=n_q, qt=qt,
                              win=win, hw=hw, wp2=wp2)

    # ---- after(): crop, rearrange back, f32 bias + residual, r2c ----
    net = out_flat[:, :, :q_total].reshape(bz, cout, tq, hp2, wp2)
    net = net[:, :, :t, :h, :w]
    net = net.reshape(b, z, 2, c, t, h, w)
    net = jnp.transpose(net, (0, 3, 1, 4, 5, 6, 2))        # (b,c,z,t,h,w,2)
    bias_f = bias.astype(jnp.float32)
    bias_r = bias_f[:c].reshape(1, c, 1, 1, 1, 1)          # '(r c)': r=0 block
    bias_i = bias_f[c:].reshape(1, c, 1, 1, 1, 1)          # r=1 block
    delta = (net[..., 0] + bias_r) + 1j * (net[..., 1] + bias_i)
    return x + delta, None
    # TODO(synk): torch.utils.checkpoint (checkpointing=True) is a training-
    # memory feature with no effect on forward outputs; not translated.


def reference_forward(x, w_dhwio, bias, min_t=4):
    """Pure-JAX f32 reference (lax.conv_general_dilated) of the same forward."""
    b, c, z, t, h, w = x.shape
    xr = jnp.stack([jnp.real(x), jnp.imag(x)], axis=-1).astype(jnp.float32)

    net_in = jnp.transpose(xr, (0, 2, 6, 1, 3, 4, 5)).reshape(b * z, 2 * c, t, h, w)
    rss = jnp.sqrt(jnp.sum(jnp.abs(x) ** 2, axis=1))              # (b, z, t, h, w)
    net_in = jnp.concatenate([net_in, rss.reshape(b * z, 1, t, h, w)], axis=1)
    if t < min_t:
        net_in = jnp.pad(net_in, ((0, 0), (0, 0), (0, min_t - 1), (0, 0), (0, 0)),
                         mode="edge")

    out = lax.conv_general_dilated(
        net_in, w_dhwio.astype(jnp.float32),
        window_strides=(1, 1, 1), padding=[(1, 1)] * 3,
        dimension_numbers=("NCDHW", "DHWIO", "NCDHW"))
    out = out + bias[None, :, None, None, None]

    out = out[:, :, :t]
    out = out.reshape(b, z, 2, c, t, h, w)
    out = jnp.transpose(out, (0, 3, 1, 4, 5, 6, 2))
    res = xr + out
    return res[..., 0] + 1j * res[..., 1], None


if __name__ == "__main__":
    # small shapes consistent with the module: (b, coils, z, t, x, y)
    b, c, z, t, h, w = 1, 2, 2, 4, 16, 16
    cin, cout = 2 * c + 1, 2 * c

    key = jax.random.PRNGKey(0)
    k1, k2, k3 = jax.random.split(key, 3)
    # bf16-representable inputs/weights so the bf16-streamed kernel and the
    # f32 reference see identical operands; with the residual and bias now
    # applied in f32, the only remaining delta is the bf16 rounding of the
    # in-kernel RSS channel.
    x_real = jax.random.normal(k1, (b, c, z, t, h, w), jnp.float32)
    x_imag = jax.random.normal(k2, (b, c, z, t, h, w), jnp.float32)
    x_real = x_real.astype(jnp.bfloat16).astype(jnp.float32)
    x_imag = x_imag.astype(jnp.bfloat16).astype(jnp.float32)
    x = (x_real + 1j * x_imag).astype(jnp.complex64)

    # deterministic synthetic Conv3d(cin -> cout, 3x3x3) parameters, DHWIO layout
    w_dhwio = 0.1 * jax.random.normal(k3, (3, 3, 3, cin, cout), jnp.float32)
    w_dhwio = w_dhwio.astype(jnp.bfloat16).astype(jnp.float32)
    bias = 0.01 * jnp.arange(cout, dtype=jnp.float32)

    # q_tile=512 exercises the multi-chunk grid (3 chunks x 2 volumes here).
    fwd = jax.jit(functools.partial(cnn_wrapper_forward, q_tile=512))

    out, hstate = fwd(x, w_dhwio, bias)
    out = jax.block_until_ready(out)
    ref, _ = reference_forward(x, w_dhwio, bias)
    ref = jax.block_until_ready(ref)

    assert out.shape == x.shape and out.dtype == jnp.complex64
    assert hstate is None
    np.testing.assert_allclose(np.asarray(out), np.asarray(ref),
                               rtol=1e-2, atol=1e-2)

    # Also exercise the t < min_t replicate-pad branch (walrus-bug pad of
    # min_t - 1 frames) and the b*z == 1 case, where the chunk axis alone
    # feeds the grid / both TensorCores.
    x2 = x[:, :, :1, :2]
    out2, _ = fwd(x2, w_dhwio, bias)
    out2 = jax.block_until_ready(out2)
    ref2, _ = reference_forward(x2, w_dhwio, bias)
    ref2 = jax.block_until_ready(ref2)
    np.testing.assert_allclose(np.asarray(out2), np.asarray(ref2),
                               rtol=1e-2, atol=1e-2)

    print("KERNEL_OK")
</pallas_src>

<mosaic_0001>
module attributes {stable_mosaic.version = 11 : i64} {
  func.func @kernel(%arg0: i32, %arg1: i32, %arg2: memref<1x4x1280xbf16, #tpu.memory_space<vmem>>, %arg3: memref<9x4x15xbf16, #tpu.memory_space<vmem>>, %arg4: memref<1x4x512xf32, #tpu.memory_space<vmem>>, %arg5: memref<15x1280xbf16, #tpu.memory_space<vmem>>) attributes {dimension_semantics = [#tpu.dimension_semantics<parallel>, #tpu.dimension_semantics<parallel>], iteration_bounds = array<i64: 2, 3>, scalar_prefetch = 0 : i64, scratch_operands = 1 : i64, tpu.core_type = #tpu.core_type<tc>, window_params = [{transform_indices = @transform_0, window_bounds = array<i64: 1, 4, 1280>}, {pipeline_mode = #tpu.pipeline_mode<synchronous>, transform_indices = @transform_1, window_bounds = array<i64: 9, 4, 15>}, {transform_indices = @transform_2, window_bounds = array<i64: 1, 4, 512>}]} {
    %c0 = arith.constant 0 : index
    %c0_0 = arith.constant 0 : index
    %c0_1 = arith.constant 0 : index
    %0 = vector.load %arg2[%c0, %c0_0, %c0_1] : memref<1x4x1280xbf16, #tpu.memory_space<vmem>>, vector<1x4x1280xbf16>
    %1 = vector.shape_cast %0 : vector<1x4x1280xbf16> to vector<4x1280xbf16>
    %2 = arith.extf %1 : vector<4x1280xbf16> to vector<4x1280xf32>
    %3 = arith.mulf %2, %2 : vector<4x1280xf32>
    %cst = arith.constant dense<0.000000e+00> : vector<1280xf32>
    %4 = vector.multi_reduction <add>, %3, %cst [0] : vector<4x1280xf32> to vector<1280xf32>
    %5 = vector.shape_cast %4 : vector<1280xf32> to vector<1x1280xf32>
    %6 = math.sqrt %5 : vector<1x1280xf32>
    %7 = arith.truncf %6 : vector<1x1280xf32> to vector<1x1280xbf16>
    %cst_2 = arith.constant 0.000000e+00 : bf16
    %8 = vector.broadcast %cst_2 : bf16 to vector<4x2xbf16>
    %9 = tpu.concatenate %1, %8 in 1 : vector<4x1280xbf16>, vector<4x2xbf16> -> vector<4x1282xbf16>
    %cst_3 = arith.constant 0.000000e+00 : bf16
    %10 = vector.broadcast %cst_3 : bf16 to vector<1x2xbf16>
    %11 = tpu.concatenate %7, %10 in 1 : vector<1x1280xbf16>, vector<1x2xbf16> -> vector<1x1282xbf16>
    %12 = vector.extract_strided_slice %9 {offsets = [0, 0], sizes = [4, 1280], strides = [1, 1]} : vector<4x1282xbf16> to vector<4x1280xbf16>
    %13 = vector.extract_strided_slice %11 {offsets = [0, 0], sizes = [1, 1280], strides = [1, 1]} : vector<1x1282xbf16> to vector<1x1280xbf16>
    %14 = vector.extract_strided_slice %9 {offsets = [0, 1], sizes = [4, 1280], strides = [1, 1]} : vector<4x1282xbf16> to vector<4x1280xbf16>
    %15 = vector.extract_strided_slice %11 {offsets = [0, 1], sizes = [1, 1280], strides = [1, 1]} : vector<1x1282xbf16> to vector<1x1280xbf16>
    %16 = vector.extract_strided_slice %9 {offsets = [0, 2], sizes = [4, 1280], strides = [1, 1]} : vector<4x1282xbf16> to vector<4x1280xbf16>
    %17 = vector.extract_strided_slice %11 {offsets = [0, 2], sizes = [1, 1280], strides = [1, 1]} : vector<1x1282xbf16> to vector<1x1280xbf16>
    %18 = tpu.concatenate %12, %13, %14, %15, %16, %17 in 0 : vector<4x1280xbf16>, vector<1x1280xbf16>, vector<4x1280xbf16>, vector<1x1280xbf16>, vector<4x1280xbf16>, vector<1x1280xbf16> -> vector<15x1280xbf16>
    %c0_4 = arith.constant 0 : index
    %c0_5 = arith.constant 0 : index
    %19 = vector.load %arg5[%c0_4, %c0_5] : memref<15x1280xbf16, #tpu.memory_space<vmem>>, vector<15x1280xbf16>
    tpu.vector_store %arg5[%c0_4, %c0_5], %18 {strides = array<i32>} : memref<15x1280xbf16, #tpu.memory_space<vmem>>, vector<15x1280xbf16>,
    %cst_6 = arith.constant 0.000000e+00 : f32
    %20 = vector.broadcast %cst_6 : f32 to vector<4x512xf32>
    %cst_7 = arith.constant 0.000000e+00 : f32
    %21 = vector.broadcast %cst_7 : f32 to vector<4x512xf32>
    %cst_8 = arith.constant 0.000000e+00 : f32
    %22 = vector.broadcast %cst_8 : f32 to vector<4x512xf32>
    %c0_9 = arith.constant 0 : index
    %c0_10 = arith.constant 0 : index
    %23 = vector.load %arg5[%c0_9, %c0_10] : memref<15x1280xbf16, #tpu.memory_space<vmem>>, vector<15x512xbf16>
    %c0_11 = arith.constant 0 : index
    %c0_12 = arith.constant 0 : index
    %c0_13 = arith.constant 0 : index
    %24 = vector.load %arg3[%c0_11, %c0_12, %c0_13] : memref<9x4x15xbf16, #tpu.memory_space<vmem>>, vector<1x4x15xbf16>
    %25 = vector.shape_cast %24 : vector<1x4x15xbf16> to vector<4x15xbf16>
    %cst_14 = arith.constant dense<0.000000e+00> : vector<4x512xf32>
    %26 = tpu.matmul %25, %23, %cst_14 {dimension_numbers = #tpu.dot_dimension_numbers<[1], [0], [0], [1], [0, 0, 1, 1], [], []>} : vector<4x15xbf16>, vector<15x512xbf16>, vector<4x512xf32> -> vector<4x512xf32>
    %27 = arith.addf %20, %26 : vector<4x512xf32>
    %c0_15 = arith.constant 0 : index
    %c18 = arith.constant 18 : index
    %28 = vector.load %arg5[%c0_15, %c18] : memref<15x1280xbf16, #tpu.memory_space<vmem>>, vector<15x512xbf16>
    %c1 = arith.constant 1 : index
    %c0_16 = arith.constant 0 : index
    %c0_17 = arith.constant 0 : index
    %29 = vector.load %arg3[%c1, %c0_16, %c0_17] : memref<9x4x15xbf16, #tpu.memory_space<vmem>>, vector<1x4x15xbf16>
    %30 = vector.shape_cast %29 : vector<1x4x15xbf16> to vector<4x15xbf16>
    %cst_18 = arith.constant dense<0.000000e+00> : vector<4x512xf32>
    %31 = tpu.matmul %30, %28, %cst_18 {dimension_numbers = #tpu.dot_dimension_numbers<[1], [0], [0], [1], [0, 0, 1, 1], [], []>} : vector<4x15xbf16>, vector<15x512xbf16>, vector<4x512xf32> -> vector<4x512xf32>
    %32 = arith.addf %27, %31 : vector<4x512xf32>
    %c0_19 = arith.constant 0 : index
    %c36 = arith.constant 36 : index
    %33 = vector.load %arg5[%c0_19, %c36] : memref<15x1280xbf16, #tpu.memory_space<vmem>>, vector<15x512xbf16>
    %c2 = arith.constant 2 : index
    %c0_20 = arith.constant 0 : index
    %c0_21 = arith.constant 0 : index
    %34 = vector.load %arg3[%c2, %c0_20, %c0_21] : memref<9x4x15xbf16, #tpu.memory_space<vmem>>, vector<1x4x15xbf16>
    %35 = vector.shape_cast %34 : vector<1x4x15xbf16> to vector<4x15xbf16>
    %cst_22 = arith.constant dense<0.000000e+00> : vector<4x512xf32>
    %36 = tpu.matmul %35, %33, %cst_22 {dimension_numbers = #tpu.dot_dimension_numbers<[1], [0], [0], [1], [0, 0, 1, 1], [], []>} : vector<4x15xbf16>, vector<15x512xbf16>, vector<4x512xf32> -> vector<4x512xf32>
    %37 = arith.addf %32, %36 : vector<4x512xf32>
    %c0_23 = arith.constant 0 : index
    %c324 = arith.constant 324 : index
    %38 = vector.load %arg5[%c0_23, %c324] : memref<15x1280xbf16, #tpu.memory_space<vmem>>, vector<15x512xbf16>
    %c3 = arith.constant 3 : index
    %c0_24 = arith.constant 0 : index
    %c0_25 = arith.constant 0 : index
    %39 = vector.load %arg3[%c3, %c0_24, %c0_25] : memref<9x4x15xbf16, #tpu.memory_space<vmem>>, vector<1x4x15xbf16>
    %40 = vector.shape_cast %39 : vector<1x4x15xbf16> to vector<4x15xbf16>
    %cst_26 = arith.constant dense<0.000000e+00> : vector<4x512xf32>
    %41 = tpu.matmul %40, %38, %cst_26 {dimension_numbers = #tpu.dot_dimension_numbers<[1], [0], [0], [1], [0, 0, 1, 1], [], []>} : vector<4x15xbf16>, vector<15x512xbf16>, vector<4x512xf32> -> vector<4x512xf32>
    %42 = arith.addf %21, %41 : vector<4x512xf32>
    %c0_27 = arith.constant 0 : index
    %c342 = arith.constant 342 : index
    %43 = vector.load %arg5[%c0_27, %c342] : memref<15x1280xbf16, #tpu.memory_space<vmem>>, vector<15x512xbf16>
    %c4 = arith.constant 4 : index
    %c0_28 = arith.constant 0 : index
    %c0_29 = arith.constant 0 : index
    %44 = vector.load %arg3[%c4, %c0_28, %c0_29] : memref<9x4x15xbf16, #tpu.memory_space<vmem>>, vector<1x4x15xbf16>
    %45 = vector.shape_cast %44 : vector<1x4x15xbf16> to vector<4x15xbf16>
    %cst_30 = arith.constant dense<0.000000e+00> : vector<4x512xf32>
    %46 = tpu.matmul %45, %43, %cst_30 {dimension_numbers = #tpu.dot_dimension_numbers<[1], [0], [0], [1], [0, 0, 1, 1], [], []>} : vector<4x15xbf16>, vector<15x512xbf16>, vector<4x512xf32> -> vector<4x512xf32>
    %47 = arith.addf %42, %46 : vector<4x512xf32>
    %c0_31 = arith.constant 0 : index
    %c360 = arith.constant 360 : index
    %48 = vector.load %arg5[%c0_31, %c360] : memref<15x1280xbf16, #tpu.memory_space<vmem>>, vector<15x512xbf16>
    %c5 = arith.constant 5 : index
    %c0_32 = arith.constant 0 : index
    %c0_33 = arith.constant 0 : index
    %49 = vector.load %arg3[%c5, %c0_32, %c0_33] : memref<9x4x15xbf16, #tpu.memory_space<vmem>>, vector<1x4x15xbf16>
    %50 = vector.shape_cast %49 : vector<1x4x15xbf16> to vector<4x15xbf16>
    %cst_34 = arith.constant dense<0.000000e+00> : vector<4x512xf32>
    %51 = tpu.matmul %50, %48, %cst_34 {dimension_numbers = #tpu.dot_dimension_numbers<[1], [0], [0], [1], [0, 0, 1, 1], [], []>} : vector<4x15xbf16>, vector<15x512xbf16>, vector<4x512xf32> -> vector<4x512xf32>
    %52 = arith.addf %47, %51 : vector<4x512xf32>
    %c0_35 = arith.constant 0 : index
    %c648 = arith.constant 648 : index
    %53 = vector.load %arg5[%c0_35, %c648] : memref<15x1280xbf16, #tpu.memory_space<vmem>>, vector<15x512xbf16>
    %c6 = arith.constant 6 : index
    %c0_36 = arith.constant 0 : index
    %c0_37 = arith.constant 0 : index
    %54 = vector.load %arg3[%c6, %c0_36, %c0_37] : memref<9x4x15xbf16, #tpu.memory_space<vmem>>, vector<1x4x15xbf16>
    %55 = vector.shape_cast %54 : vector<1x4x15xbf16> to vector<4x15xbf16>
    %cst_38 = arith.constant dense<0.000000e+00> : vector<4x512xf32>
    %56 = tpu.matmul %55, %53, %cst_38 {dimension_numbers = #tpu.dot_dimension_numbers<[1], [0], [0], [1], [0, 0, 1, 1], [], []>} : vector<4x15xbf16>, vector<15x512xbf16>, vector<4x512xf32> -> vector<4x512xf32>
    %57 = arith.addf %22, %56 : vector<4x512xf32>
    %c0_39 = arith.constant 0 : index
    %c666 = arith.constant 666 : index
    %58 = vector.load %arg5[%c0_39, %c666] : memref<15x1280xbf16, #tpu.memory_space<vmem>>, vector<15x512xbf16>
    %c7 = arith.constant 7 : index
    %c0_40 = arith.constant 0 : index
    %c0_41 = arith.constant 0 : index
    %59 = vector.load %arg3[%c7, %c0_40, %c0_41] : memref<9x4x15xbf16, #tpu.memory_space<vmem>>, vector<1x4x15xbf16>
    %60 = vector.shape_cast %59 : vector<1x4x15xbf16> to vector<4x15xbf16>
    %cst_42 = arith.constant dense<0.000000e+00> : vector<4x512xf32>
    %61 = tpu.matmul %60, %58, %cst_42 {dimension_numbers = #tpu.dot_dimension_numbers<[1], [0], [0], [1], [0, 0, 1, 1], [], []>} : vector<4x15xbf16>, vector<15x512xbf16>, vector<4x512xf32> -> vector<4x512xf32>
    %62 = arith.addf %57, %61 : vector<4x512xf32>
    %c0_43 = arith.constant 0 : index
    %c684 = arith.constant 684 : index
    %63 = vector.load %arg5[%c0_43, %c684] : memref<15x1280xbf16, #tpu.memory_space<vmem>>, vector<15x512xbf16>
    %c8 = arith.constant 8 : index
    %c0_44 = arith.constant 0 : index
    %c0_45 = arith.constant 0 : index
    %64 = vector.load %arg3[%c8, %c0_44, %c0_45] : memref<9x4x15xbf16, #tpu.memory_space<vmem>>, vector<1x4x15xbf16>
    %65 = vector.shape_cast %64 : vector<1x4x15xbf16> to vector<4x15xbf16>
    %cst_46 = arith.constant dense<0.000000e+00> : vector<4x512xf32>
    %66 = tpu.matmul %65, %63, %cst_46 {dimension_numbers = #tpu.dot_dimension_numbers<[1], [0], [0], [1], [0, 0, 1, 1], [], []>} : vector<4x15xbf16>, vector<15x512xbf16>, vector<4x512xf32> -> vector<4x512xf32>
    %67 = arith.addf %62, %66 : vector<4x512xf32>
    %68 = arith.addf %37, %52 : vector<4x512xf32>
    %69 = arith.addf %68, %67 : vector<4x512xf32>
    %c0_47 = arith.constant 0 : index
    %c0_48 = arith.constant 0 : index
    %c0_49 = arith.constant 0 : index
    %70 = vector.load %arg4[%c0_47, %c0_48, %c0_49] : memref<1x4x512xf32, #tpu.memory_space<vmem>>, vector<1x4x512xf32>
    %71 = vector.shape_cast %70 : vector<1x4x512xf32> to vector<4x512xf32>
    %72 = vector.shape_cast %69 : vector<4x512xf32> to vector<1x4x512xf32>
    tpu.vector_store %arg4[%c0_47, %c0_48, %c0_49], %72 {strides = array<i32>} : memref<1x4x512xf32, #tpu.memory_space<vmem>>, vector<1x4x512xf32>,
    return
  }
  func.func @transform_0(%arg0: i32, %arg1: i32) -> (i32, i32, i32) {
    %c3_i32 = arith.constant 3 : i32
    %0 = arith.muli %arg0, %c3_i32 : i32
    %1 = arith.addi %0, %arg1 : i32
    %c0_i32 = arith.constant 0 : i32
    %c0_i32_0 = arith.constant 0 : i32
    %c0_i32_1 = arith.constant 0 : i32
    return %1, %c0_i32, %c0_i32_0 : i32, i32, i32
  }
  func.func @transform_1(%arg0: i32, %arg1: i32) -> (i32, i32, i32) {
    %c0_i32 = arith.constant 0 : i32
    %c0_i32_0 = arith.constant 0 : i32
    %c0_i32_1 = arith.constant 0 : i32
    %c0_i32_2 = arith.constant 0 : i32
    return %c0_i32, %c0_i32_0, %c0_i32_1 : i32, i32, i32
  }
  func.func @transform_2(%arg0: i32, %arg1: i32) -> (i32, i32, i32) {
    %c0_i32 = arith.constant 0 : i32
    %c0_i32_0 = arith.constant 0 : i32
    return %arg0, %c0_i32, %arg1 : i32, i32, i32
  }
}

</mosaic_0001>

<bundles_post_ra>
// kernel: custom-call
= control target key start
LH: loop header
LB: loop body
LE: loop exit
PB: predicated region body
PF: predicated region fallthrough
CT: control target
= control target key end

     0   :  { %2 = vsyncpa [#allocation0], 0  ;;  %s61_s0 = inlined_call_operand.hbm [shape: c64[1,2,2,4,16,16], index: 0, kind: input, shape index: {}]   ;;  %s62_s1 = inlined_call_operand.vmem [shape: f32[1,2,2,4,16,16], index: 1, kind: output, shape index: {}]  }
   0x1   :  { %s3_s8 = sshll.u32 %s62_s1, 4  ;;  %s9_s11 = scalar_lea.hbm %s61_s0, 4096  ;;  %s4_s8 = int_to_ptr.vmem [resolvable:$true] %s3_s8 }
   0x2   :  { %p10_p0 = scmp.ne.s32.totalorder %s61_s0, %s9_s11  ;;  %s11_s16 = scalar_lea.hbm %s61_s0, 8192 }
   0x3   :  { %p12_p1 = scmp.lt.u32.totalorder %s11_s16, %s9_s11  ;;  %p13_p2 = scmp.lt.u32.totalorder %s9_s11, %s61_s0 }
   0x5   :  { %p14_p3 = por %p13_p2, %p12_p1 }
   0x7   :  { %p15_p4 = pnand %p14_p3, %p10_p0 }
   0x9   :  { %18 = shalt.err (!%p15_p4)  }
   0xa   :  { %s19_s1 = scalar_lea.vmem %s4_s8, 4096  ;;  %p24_p6 = scmp.lt.s32.totalorder %s4_s8, %s4_s8 }
   0xb   :  { %p20_p5 = scmp.ne.s32.totalorder %s4_s8, %s19_s1  ;;  %p25_p7 = scmp.lt.s32.totalorder %s19_s1, %s19_s1 }
   0xd   :  { %p26_p8 = por %p25_p7, %p24_p6 }
   0xf   :  { %p27_p9 = pnand %p26_p8, %p20_p5 }
  0x11   :  { %30 = shalt.err (!%p27_p9)  }
  0x12   :  { %6 = dma.hbm_to_vmem [thread:$0]  %s61_s0, 4096, %s4_s8, [#allocation0] }
  0x13   :  { %31 = dma.done.wait [#allocation0], 4096  }
  0x14   :  { %32 = vsyncadd [#allocation0], 4294963200 }
  0x15   :  { %8 = vsyncpa [#allocation0], 1 }

// kernel: custom-call.1
= control target key start
LH: loop header
LB: loop body
LE: loop exit
PB: predicated region body
PF: predicated region fallthrough
CT: control target
= control target key end

     0   :  { %s59_s0 = inlined_call_operand.hbm [shape: c64[1,2,2,4,16,16], index: 0, kind: input, shape index: {}]   ;;  %s60_s1 = inlined_call_operand.vmem [shape: f32[1,2,2,4,16,16], index: 1, kind: output, shape index: {}]  }
   0x1   :  { %s2_s8 = scalar_lea.hbm %s59_s0, 4096 }
   0x2   :  { %3 = vsyncpa [#allocation0], 0  ;;  %s4_s11 = sshll.u32 %s60_s1, 4  ;;  %s34_s14 = scalar_lea.hbm %s59_s0, 8192  ;;  %s5_s11 = int_to_ptr.vmem [resolvable:$true] %s4_s11 }
   0x3   :  { %p11_p0 = scmp.ne.s32.totalorder %s2_s8, %s34_s14  ;;  %p13_p1 = scmp.lt.u32.totalorder %s2_s8, %s59_s0 }
   0x4   :  { %p14_p2 = scmp.lt.u32.totalorder %s34_s14, %s34_s14  ;;  %p16_p4 = scmp.lt.u32.totalorder %s34_s14, %s2_s8 }
   0x6   :  { %p15_p3 = por %p14_p2, %p13_p1 }
   0x8   :  { %p17_p5 = por %p16_p4, %p15_p3 }
   0xa   :  { %p18_p6 = pnand %p17_p5, %p11_p0 }
   0xc   :  { %21 = shalt.err (!%p18_p6)  }
   0xd   :  { %s22_s17 = scalar_lea.vmem %s5_s11, 4096  ;;  %p27_p8 = scmp.lt.s32.totalorder %s5_s11, %s5_s11 }
   0xe   :  { %p23_p7 = scmp.ne.s32.totalorder %s5_s11, %s22_s17  ;;  %p28_p9 = scmp.lt.s32.totalorder %s22_s17, %s22_s17 }
  0x10   :  { %p29_p10 = por %p28_p9, %p27_p8 }
  0x12   :  { %p30_p11 = pnand %p29_p10, %p23_p7 }
  0x14   :  { %33 = shalt.err (!%p30_p11)  }
  0x15   :  { %7 = dma.hbm_to_vmem [thread:$0]  %s2_s8, 4096, %s5_s11, [#allocation0] }
  0x16   :  { %35 = dma.done.wait [#allocation0], 4096  }
  0x17   :  { %36 = vsyncadd [#allocation0], 4294963200 }
  0x18   :  { %9 = vsyncpa [#allocation0], 1 }

// kernel: custom-call.2
= control target key start
LH: loop header
LB: loop body
LE: loop exit
PB: predicated region body
PF: predicated region fallthrough
CT: control target
= control target key end

     0   :  { %s126_s0 = inlined_call_operand.vmem [shape: f32[1,2,2,4,16,16], index: 0, kind: input, shape index: {}]   ;;  %s127_s1 = inlined_call_operand.vmem [shape: f32[1,2,2,4,16,16], index: 1, kind: input, shape index: {}]   ;;  %s128_s2 = inlined_call_operand.hbm [shape: c64[1,2,2,4,16,16], index: 2, kind: output, shape index: {}]  }
   0x1   :  { %s87_s11 = scalar_lea.hbm %s128_s2, 4096 }
   0x2   :  { %4 = vsyncpa [#allocation0], 0  ;;  %s5_s14 = sshll.u32 %s126_s0, 4  ;;  %s6_s14 = int_to_ptr.vmem [resolvable:$true] %s5_s14 }
   0x3   :  { %s18_s15 = scalar_lea.vmem %s6_s14, 4096  ;;  %p23_p1 = scmp.lt.s32.totalorder %s6_s14, %s6_s14 }
   0x4   :  { %p19_p0 = scmp.ne.s32.totalorder %s6_s14, %s18_s15  ;;  %p24_p2 = scmp.lt.s32.totalorder %s18_s15, %s18_s15 }
   0x6   :  { %p25_p3 = por %p24_p2, %p23_p1 }
   0x8   :  { %p26_p4 = pnand %p25_p3, %p19_p0 }
   0xa   :  { %29 = shalt.err (!%p26_p4)  }
   0xb   :  { %p31_p5 = scmp.ne.s32.totalorder %s128_s2, %s87_s11  ;;  %s32_s0 = scalar_lea.hbm %s128_s2, 8192 }
   0xc   :  { %p33_p6 = scmp.lt.u32.totalorder %s32_s0, %s87_s11  ;;  %p34_p7 = scmp.lt.u32.totalorder %s87_s11, %s128_s2 }
   0xe   :  { %p35_p8 = por %p34_p7, %p33_p6 }
  0x10   :  { %p36_p9 = pnand %p35_p8, %p31_p5 }
  0x12   :  { %39 = shalt.err (!%p36_p9)  }
  0x13   :  { %8 = dma.vmem_to_hbm [thread:$0]  %s6_s14, 4096, %s128_s2, [#allocation0] }
  0x14   :  { %65 = dma.done.wait [#allocation0], 4096  }
  0x15   :  { %66 = vsyncadd [#allocation0], 4294963200 }
  0x16   :  { %10 = vsyncpa [#allocation0], 1 }
  0x17   :  { %11 = vsyncpa [#allocation1], 0  ;;  %s12_s28 = sshll.u32 %s127_s1, 4  ;;  %s13_s28 = int_to_ptr.vmem [resolvable:$true] %s12_s28 }
  0x18   :  { %s40_s29 = scalar_lea.vmem %s13_s28, 4096  ;;  %p45_p11 = scmp.lt.s32.totalorder %s13_s28, %s13_s28 }
  0x19   :  { %p41_p10 = scmp.ne.s32.totalorder %s13_s28, %s40_s29  ;;  %p46_p12 = scmp.lt.s32.totalorder %s40_s29, %s40_s29 }
  0x1b   :  { %p47_p13 = por %p46_p12, %p45_p11 }
  0x1d   :  { %p48_p0 = pnand %p47_p13, %p41_p10 }
  0x1f   :  { %51 = shalt.err (!%p48_p0)  }
  0x20   :  { %p53_p1 = scmp.ne.s32.totalorder %s87_s11, %s32_s0  ;;  %p56_p2 = scmp.lt.u32.totalorder %s32_s0, %s32_s0 }
  0x22   :  { %p57_p3 = por %p56_p2, %p34_p7 }
  0x24   :  { %p59_p4 = por %p57_p3, %p33_p6 }
  0x26   :  { %p60_p5 = pnand %p59_p4, %p53_p1 }
  0x28   :  { %63 = shalt.err (!%p60_p5)  }
  0x29   :  { %15 = dma.vmem_to_hbm [thread:$0]  %s13_s28, 4096, %s87_s11, [#allocation1] }
  0x2a   :  { %67 = dma.done.wait [#allocation1], 4096  }
  0x2b   :  { %68 = vsyncadd [#allocation1], 4294963200 }
  0x2c   :  { %17 = vsyncpa [#allocation1], 1 }

// kernel: cnn_wrapper_forward.1
= control target key start
LH: loop header
LB: loop body
LE: loop exit
PB: predicated region body
PF: predicated region fallthrough
CT: control target
= control target key end

     0   :  { %s2435_s9 = smov 0   ;;  %s2437_s10 = smov 0   ;;  %s3145_s0 = inlined_call_operand.vmem [shape: bf16[6,4,1280], index: 0, kind: input, shape index: {}]   ;;  %s3146_s1 = inlined_call_operand.vmem [shape: bf16[9,4,15], index: 1, kind: input, shape index: {}]   ;;  %s3147_s2 = inlined_call_operand.vmem [shape: f32[2,4,1536], index: 2, kind: output, shape index: {}]  }
   0x1   :  { %s2439_s11 = smov 0   ;;  %s2441_s12 = smov 0  }
   0x2   :  { %s2443_s13 = smov 0  }
   0x3 LB: > { %s21_s14 = sadd.s32 1, %s2397_s11  ;;  %s24_s15 = sadd.s32 1, %s2401_s12  ;;  %s2405_s13 = sphi %s2443_s13, %s12_s13   ;;  %s2401_s12 = sphi %s2441_s12, %s3159_s12   ;;  %s2397_s11 = sphi %s2439_s11, %s3158_s11   ;;  %s2393_s10 = sphi %s2437_s10, %s3157_s10   ;;  %s2389_s9 = sphi %s2435_s9, %s3156_s9  }
   0x4   : > { %p22_p0 = scmp.ge.s32.totalorder %s21_s14, 3  ;;  %p2127_p1 = scmp.ge.s32.totalorder %s2405_s13, 1 }
   0x5   : > { %p134_p2 = scmp.lt.s32.totalorder %s2405_s13, 7 }
   0x6   : > { %s3161_s14 = smov (%p22_p0, %s21_s14), 0  ;;  %s3163_s15 = smov (!%p22_p0, %s24_s15), %s2401_s12 }
   0x7   : > { %p135_p3 = pnand %p2127_p1, %p134_p2  ;;  %p26_p4 = scmp.ge.s32.totalorder %s3163_s15, 2 }
   0x8   : > { %s162_s16 = smul.u32 (!%p135_p3), 3, %s2393_s10  ;;  %v368_v0 = vlaneseq (!%p135_p3)  ;;  %v2407_v1 = vmov (!%p135_p3), 1983009808   ;;  %v2408_v3 = vmov (!%p135_p3), 0   ;;  %vm210_vm0 = vcmask (!%p135_p3), 1043456   ;;  %s2409_s22 = smov (!%p135_p3), 126  }
   0x9   : > { %s3165_s15 = smov (%p26_p4, %s3163_s15), 0  ;;  %138 = sbr.rel (%p135_p3) target bundleno = 651 (0x28b), region = 28 }
   0xa   : > { %v366_v2 = vunpack.c.l.s4 (!%p135_p3), %v2407_v1  ;;  %1051 = vmatprep.mubr.bf16.mxu1 (!%p135_p3), %v2408_v3  ;;  %1010 = vmatprep.mubr.bf16.mxu0 (!%p135_p3), %v2408_v3  ;;  %s163_s17 = sadd.s32 (!%p135_p3), %s2389_s9, %s162_s16  ;;  %v369_v5 = vshrl.u32 (!%p135_p3), %v368_v0, 7  ;;  %s2410_s23 = smov (!%p135_p3), 127   ;;  %vm728_vm15 = vcmask (!%p135_p3), 1041408  }
   0xb   : > { %p164_p5 = scmp.lt.s32.totalorder (!%p135_p3), %s163_s17, 5  ;;  %s2411_s24 = smov (!%p135_p3), 110  }
   0xc   : > { %v367_v4 = vunpack.c.0.s8 (!%p135_p3), %v366_v2  ;;  %s2412_s25 = smov (!%p135_p3), 92   ;;  %s2413_s26 = smov (!%p135_p3), 42  }
   0xd   : > { %s2414_s27 = smov (!%p135_p3), 60   ;;  %s2415_s28 = smov (!%p135_p3), 24  }
   0xe   : > { %v2473_v6 = vsub.s32 (!%p135_p3), %v367_v4, %v369_v5  ;;  %s2416_s29 = smov (!%p135_p3), 102   ;;  %s2417_s30 = smov (!%p135_p3), 120  }
   0xf   : > { %s2418_s3 = smov (!%p135_p3), 84   ;;  %p172_p6 = scmp.lt.s32.totalorder (!%p135_p3), %s2393_s10, 1 }
  0x10   : > { %s3167_s17 = smov (!%p164_p5, %s163_s17), 5 }
  0x11   : > { %s2248_s18 = smul.u32 20, %s3167_s17  ;;  %s3169_s10 = smov (!%p172_p6, %s2393_s10), 1 }
  0x13   : > { %s2478_s21 = scalar_lea.vmem %s3145_s0, %s2248_s18 }
  0x14   : > { %v2481_v7 = vld [vmem:[%s2478_s21] sm:$0xff]  ;;  %v2484_v8 = vld [vmem:[%s2478_s21 + $0x8] sm:$0xff] }
  0x15   : > { %v2488_v9 = vrot.slane %v2481_v7, %v2473_v6  ;;  %v185_v10 = vunpack.c.l.bf16 %v2481_v7  ;;  %v186_v11 = vunpack.c.h.bf16 %v2481_v7  ;;  %v187_v12 = vunpack.c.l.bf16 %v2484_v8 }
  0x16   : > { %v188_v13 = vunpack.c.h.bf16 %v2484_v8  ;;  %v2496_v14 = vrot.slane %v2484_v8, %v2473_v6  ;;  %v364_v52 = vcombine.high %v2481_v7, %v2481_v7  ;;  %v381_v57 = vcombine.high %v2484_v8, %v2484_v8 }
  0x17   : > { %v641_v15 = vrot.slane %v2488_v9, 3  ;;  %v190_v16 = vmul.f32 %v185_v10, %v185_v10  ;;  %v191_v17 = vmul.f32 %v186_v11, %v186_v11  ;;  %v2501_v18 = vcombine.high %v2488_v9, %v2488_v9 }
  0x18   : > { %v192_v19 = vmul.f32 %v187_v12, %v187_v12  ;;  %v193_v20 = vmul.f32 %v188_v13, %v188_v13  ;;  %v645_v21 = vrot.slane %v2496_v14, 3  ;;  %v427_v51 = vshrl.u32 %v2488_v9, 16 }
  0x19   : > { %652 = vrot.lane.b32.xlu1 %v641_v15, %s2409_s22  ;;  %v200_v22 = vcombine.high %v190_v16, %v190_v16  ;;  %v201_v23 = vcombine.high %v191_v17, %v191_v17  ;;  %v211_v24 = vsel %vm210_vm0, %v190_v16, 0.0  ;;  %v225_v25 = vsel %vm210_vm0, %v191_v17, 0.0 }
  0x1a   : > { %v212_v26 = vrot.slane %v211_v24, 4  ;;  %v226_v27 = vrot.slane %v225_v25, 4  ;;  %v642_v28 = vrot.slane %v2501_v18, 3  ;;  %v202_v29 = vcombine.high %v192_v19, %v192_v19 }
  0x1b   : > { %v218_v30 = vsel %vm210_vm0, %v200_v22, 0.0  ;;  %v232_v31 = vsel %vm210_vm0, %v201_v23, 0.0  ;;  %v203_v32 = vcombine.high %v193_v20, %v193_v20  ;;  %v239_v33 = vsel %vm210_vm0, %v192_v19, 0.0 }
  0x1c   : > { %v213_v34 = vadd.f32 %v212_v26, %v211_v24  ;;  %v219_v35 = vrot.slane %v218_v30, 4  ;;  %v227_v36 = vadd.f32 %v226_v27, %v225_v25  ;;  %v233_v37 = vrot.slane %v232_v31, 4  ;;  %654 = vrot.lane.b32.xlu0 %v642_v28, %s2409_s22 }
  0x1d   : > { %v240_v38 = vrot.slane %v239_v33, 4  ;;  %v246_v39 = vsel %vm210_vm0, %v202_v29, 0.0  ;;  %v253_v40 = vsel %vm210_vm0, %v193_v20, 0.0  ;;  %v260_v41 = vsel %vm210_vm0, %v203_v32, 0.0  ;;  %660 = vrot.lane.b32.xlu1 %v645_v21, %s2409_s22 }
  0x1e   : > { %v214_v42 = vrot.slane %v213_v34, 2  ;;  %v220_v43 = vadd.f32 %v219_v35, %v218_v30  ;;  %v228_v44 = vrot.slane %v227_v36, 2  ;;  %v234_v45 = vadd.f32 %v233_v37, %v232_v31 }
  0x1f   : > { %v241_v46 = vadd.f32 %v240_v38, %v239_v33  ;;  %v247_v47 = vrot.slane %v246_v39, 4  ;;  %v254_v48 = vrot.slane %v253_v40, 4  ;;  %v261_v49 = vrot.slane %v260_v41, 4 }
  0x20   : > { %v215_v50 = vadd.f32 %v214_v42, %v213_v34  ;;  %v221_v53 = vrot.slane %v220_v43, 2  ;;  %v229_v54 = vadd.f32 %v228_v44, %v227_v36  ;;  %v235_v55 = vrot.slane %v234_v45, 2 }
  0x21   : > { %v242_v56 = vrot.slane %v241_v46, 2  ;;  %v248_v59 = vadd.f32 %v247_v47, %v246_v39  ;;  %v255_v60 = vadd.f32 %v254_v48, %v253_v40  ;;  %v2521_v61 = vadd.f32 %v261_v49, %v260_v41 }
  0x22   : > { %v216_v58 = vrot.slane %v215_v50, 1  ;;  %v429_v62 = vrot.slane %v427_v51, 5  ;;  %v430_v63 = vshll.u32 %v2488_v9, 16  ;;  %v2525_v0 = vrot.slane %v364_v52, %v2473_v6 }
  0x23   : > { %v459_v1 = vshrl.u32 %v2496_v14, 16  ;;  %v222_v2 = vadd.f32 %v221_v53, %v220_v43  ;;  %v230_v4 = vrot.slane %v229_v54, 1  ;;  %v236_v5 = vadd.f32 %v235_v55, %v234_v45 }
  0x24   : > { %v462_v7 = vshll.u32 %v2496_v14, 16  ;;  %v432_v10 = vrot.slane %v430_v63, 6  ;;  %v643_v8 = vrot.slane %v2525_v0, 3  ;;  %v443_v12 = vshrl.u32 %v2525_v0, 16 }
  0x25   : > { %v461_v11 = vrot.slane %v459_v1, 5  ;;  %v446_v15 = vshll.u32 %v2525_v0, 16  ;;  %v2534_v16 = vcombine.high %v2525_v0, %v2525_v0  ;;  %v2538_v17 = vcombine.high %v2496_v14, %v2496_v14 }
  0x26   : > { %v464_v13 = vrot.slane %v462_v7, 6  ;;  %v433_v19 = vor.u32 %v432_v10, %v429_v62  ;;  %656 = vrot.lane.b32.xlu1 %v643_v8, %s2409_s22  ;;  %v445_v20 = vrot.slane %v443_v12, 5  ;;  %v435_v21 = vshrl.u32 %v2501_v18, 16 }
  0x27   : > { %v438_v22 = vshll.u32 %v2501_v18, 16  ;;  %v243_v23 = vadd.f32 %v242_v56, %v241_v46  ;;  %v249_v24 = vrot.slane %v248_v59, 2  ;;  %v448_v25 = vrot.slane %v446_v15, 6 }
  0x28   : > { %v467_v26 = vshrl.u32 %v2538_v17, 16  ;;  %v256_v27 = vrot.slane %v255_v60, 2  ;;  %514 = vrot.lane.b32.xlu0 %v433_v19, %s2410_s23  ;;  %v465_v28 = vor.u32 %v464_v13, %v461_v11  ;;  %v470_v29 = vshll.u32 %v2538_v17, 16 }
  0x29   : > { %v451_v30 = vshrl.u32 %v2534_v16, 16  ;;  %v449_v31 = vor.u32 %v448_v25, %v445_v20  ;;  %v454_v33 = vshll.u32 %v2534_v16, 16  ;;  %v2549_v34 = vrot.slane %v381_v57, %v2473_v6 }
  0x2a   : > { %v469_v32 = vrot.slane %v467_v26, 5  ;;  %v644_v35 = vrot.slane %v2534_v16, 3  ;;  %v472_v36 = vrot.slane %v470_v29, 6  ;;  %v437_v37 = vrot.slane %v435_v21, 5 }
  0x2b   : > { %v440_v38 = vrot.slane %v438_v22, 6  ;;  %518 = vrot.lane.b32.xlu1 %v449_v31, %s2410_s23  ;;  %v453_v39 = vrot.slane %v451_v30, 5  ;;  %v456_v40 = vrot.slane %v454_v33, 6  ;;  %v475_v41 = vshrl.u32 %v2549_v34, 16 }
  0x2c   : > { %v478_v42 = vshll.u32 %v2549_v34, 16  ;;  %522 = vrot.lane.b32.xlu0 %v465_v28, %s2410_s23  ;;  %v473_v43 = vor.u32 %v472_v36, %v469_v32  ;;  %v2556_v44 = vadd.f32 %v216_v58, %v215_v50  ;;  %v223_v45 = vrot.slane %v222_v2, 1 }
  0x2d   : > { %v2558_v46 = vadd.f32 %v230_v4, %v229_v54  ;;  %v263_v47 = vrot.slane %v2521_v61, 2  ;;  %v237_v48 = vrot.slane %v236_v5, 1  ;;  %v250_v49 = vadd.f32 %v249_v24, %v248_v59  ;;  %v184_v59 = vld [vmem:[%s2478_s21 + $0x10] sm:$0xf] }
  0x2e   : > { %v257_v51 = vadd.f32 %v256_v27, %v255_v60  ;;  %2344 = vrsqrt.f32 %v2556_v44  ;;  %v441_v52 = vor.u32 %v440_v38, %v437_v37  ;;  %v457_v53 = vor.u32 %v456_v40, %v453_v39 }
  0x2f   : > { %524 = vrot.lane.b32.xlu1 %v473_v43, %s2410_s23  ;;  %v2563_v55 = vadd.f32 %v223_v45, %v222_v2  ;;  %2346 = vrsqrt.f32 %v2558_v46  ;;  %v477_v50 = vrot.slane %v475_v41, 5  ;;  %v480_v54 = vrot.slane %v478_v42, 6 }
  0x30   : > { %658 = vrot.lane.b32.xlu0 %v644_v35, %s2409_s22  ;;  %v2567_v56 = vadd.f32 %v237_v48, %v236_v5  ;;  %v244_v57 = vrot.slane %v243_v23, 1  ;;  %v264_v58 = vadd.f32 %v263_v47, %v2521_v61  ;;  %v646_v60 = vrot.slane %v2538_v17, 3 }
  0x31   : > { %2348 = vrsqrt.f32 %v2563_v55  ;;  %v647_v62 = vrot.slane %v2549_v34, 3  ;;  %vm283_vm1 = vcmp.eq.f32.partialorder %v2556_v44, inf  ;;  %vm285_vm2 = vcmp.eq.f32.partialorder %v2556_v44, 0.0 }
  0x32   : > { %2350 = vrsqrt.f32 %v2567_v56  ;;  %v2578_v63 = vadd.f32 %v244_v57, %v243_v23  ;;  %v258_v1 = vrot.slane %v257_v51, 1  ;;  %v251_v2 = vrot.slane %v250_v49, 1 }
  0x33   : > { %520 = vrot.lane.b32.xlu1 %v457_v53, %s2410_s23  ;;  %v481_v61 = vor.u32 %v480_v54, %v477_v50  ;;  %v286_v4 = vand.u32 2147483648, %v2556_v44  ;;  %vm297_vm3 = vcmp.eq.f32.partialorder %v2558_v46, inf  ;;  %v189_v5 = vunpack.c.l.bf16 %v184_v59 }
  0x34   : > { %516 = vrot.lane.b32.xlu0 %v441_v52, %s2410_s23  ;;  %vm290_vm4 = vcmp.eq.f32.partialorder %v2563_v55, inf  ;;  %vm299_vm5 = vcmp.eq.f32.partialorder %v2558_v46, 0.0  ;;  %v300_v7 = vand.u32 2147483648, %v2558_v46  ;;  %2352 = vrsqrt.f32 %v2578_v63 }
  0x35   : > { %vm292_vm6 = vcmp.eq.f32.partialorder %v2563_v55, 0.0  ;;  %v2588_v10 = vadd.f32 %v258_v1, %v257_v51  ;;  %v2590_v8 = vadd.f32 %v251_v2, %v250_v49  ;;  %v265_v11 = vrot.slane %v264_v58, 1 }
  0x36   : > { %v293_v12 = vand.u32 2147483648, %v2563_v55  ;;  %vm304_vm7 = vcmp.eq.f32.partialorder %v2567_v56, inf  ;;  %vm306_vm8 = vcmp.eq.f32.partialorder %v2567_v56, 0.0  ;;  %v194_v13 = vmul.f32 %v189_v5, %v189_v5 }
  0x37   : > { %664 = vrot.lane.b32.xlu1 %v647_v62, %s2409_s22  ;;  %v307_v19 = vand.u32 2147483648, %v2567_v56  ;;  %2354 = vrsqrt.f32 %v2588_v10  ;;  %v2601_v20 = vcombine.high %v2549_v34, %v2549_v34  ;;  %v2604_v21 = vrot.slane %v184_v59, %v2473_v6 }
  0x38   : > { %v2345_v15 = vpop.eup %2344  ;;  %526 = vrot.lane.b32.xlu0 %v481_v61, %s2410_s23  ;;  %vm311_vm9 = vcmp.eq.f32.partialorder %v2578_v63, inf  ;;  %vm313_vm10 = vcmp.eq.f32.partialorder %v2578_v63, 0.0  ;;  %2356 = vrsqrt.f32 %v2590_v8  ;;  %v314_v25 = vand.u32 2147483648, %v2578_v63 }
  0x39   : > { %v2347_v22 = vpop.eup %2346  ;;  %v282_v23 = vmul.f32 %v2345_v15, %v2556_v44  ;;  %vm325_vm11 = vcmp.eq.f32.partialorder %v2588_v10, inf  ;;  %v2613_v26 = vadd.f32 %v265_v11, %v264_v58  ;;  %vm327_vm12 = vcmp.eq.f32.partialorder %v2588_v10, 0.0 }
  0x3a   : > { %v296_v24 = vmul.f32 %v2347_v22, %v2558_v46  ;;  %v204_v28 = vcombine.high %v194_v13, %v194_v13  ;;  %v267_v29 = vsel %vm210_vm0, %v194_v13, 0.0  ;;  %v328_v35 = vand.u32 2147483648, %v2588_v10 }
  0x3b   : > { %v2349_v27 = vpop.eup %2348  ;;  %v284_v6 = vsel %vm283_vm1, %v2556_v44, %v282_v23  ;;  %v268_v39 = vrot.slane %v267_v29, 4  ;;  %vm318_vm13 = vcmp.eq.f32.partialorder %v2590_v8, inf  ;;  %vm320_vm14 = vcmp.eq.f32.partialorder %v2590_v8, 0.0 }
  0x3c   : > { %v2351_v30 = vpop.eup %2350  ;;  %662 = vrot.lane.b32.xlu0 %v646_v60, %s2409_s22  ;;  %v287_v31 = vsel %vm285_vm2, %v286_v4, %v284_v6  ;;  %v289_v32 = vmul.f32 %v2349_v27, %v2563_v55  ;;  %v298_v33 = vsel %vm297_vm3, %v2558_v46, %v296_v24  ;;  %v274_v42 = vsel %vm210_vm0, %v204_v28, 0.0 }
  0x3d   : > { %v2628_v36 = vpack.c.bf16 %v287_v31, %v287_v31  ;;  %v301_v37 = vsel %vm299_vm5, %v300_v7, %v298_v33  ;;  %v303_v38 = vmul.f32 %v2351_v30, %v2567_v56  ;;  %v269_v50 = vadd.f32 %v268_v39, %v267_v29 }
  0x3e   : > { %v291_v40 = vsel %vm290_vm4, %v2563_v55, %v289_v32  ;;  %v2636_v41 = vpack.c.bf16 %v301_v37, %v301_v37  ;;  %v2353_v43 = vpop.eup %2352  ;;  %v321_v55 = vand.u32 2147483648, %v2590_v8  ;;  %v275_v59 = vrot.slane %v274_v42, 4 }
  0x3f   : > { %v685_v44 = vrot.slane %v2628_v36, 1  ;;  %v294_v45 = vsel %vm292_vm6, %v293_v12, %v291_v40  ;;  %v305_v46 = vsel %vm304_vm7, %v2567_v56, %v303_v38  ;;  %v558_v47 = vshll.u32 %v2628_v36, 16 }
  0x40   : > { %v2647_v48 = vpack.c.bf16 %v294_v45, %v294_v45  ;;  %v308_v49 = vsel %vm306_vm8, %v307_v19, %v305_v46  ;;  %v310_v51 = vmul.f32 %v2353_v43, %v2578_v63  ;;  %v687_v52 = vrot.slane %v2636_v41, 1 }
  0x41   : > { %696 = vrot.lane.b32.xlu0 %v685_v44, %s2409_s22  ;;  %v2655_v53 = vpack.c.bf16 %v308_v49, %v308_v49  ;;  %v2355_v54 = vpop.eup %2354  ;;  %v560_v1 = vrot.slane %v558_v47, 4  ;;  %v566_v61 = vshll.u32 %v2636_v41, 16  ;;  %v270_v13 = vrot.slane %v269_v50, 2 }
  0x42   : > { %v686_v57 = vrot.slane %v2647_v48, 1  ;;  %v312_v56 = vsel %vm311_vm9, %v2578_v63, %v310_v51  ;;  %v562_v58 = vshll.u32 %v2647_v48, 16  ;;  %v2357_v60 = vpop.eup %2356  ;;  %v324_v2 = vmul.f32 %v2355_v54, %v2588_v10 }
  0x43   : > { %v315_v62 = vsel %vm313_vm10, %v314_v25, %v312_v56  ;;  %v688_v4 = vrot.slane %v2655_v53, 1  ;;  %v317_v11 = vmul.f32 %v2357_v60, %v2590_v8  ;;  %v570_v12 = vshll.u32 %v2655_v53, 16 }
  0x44   : > { %698 = vrot.lane.b32.xlu1 %v686_v57, %s2409_s22  ;;  %v355_v5 = vpack.c.bf16 %v315_v62, %v315_v62  ;;  %v564_v7 = vrot.slane %v562_v58, 4  ;;  %v326_v63 = vsel %vm325_vm11, %v2588_v10, %v324_v2  ;;  %v276_v15 = vadd.f32 %v275_v59, %v274_v42 }
  0x45   : > { %700 = vrot.lane.b32.xlu0 %v687_v52, %s2409_s22  ;;  %v329_v22 = vsel %vm327_vm12, %v328_v35, %v326_v63  ;;  %v319_v23 = vsel %vm318_vm13, %v2590_v8, %v317_v11  ;;  %v483_v24 = vshrl.u32 %v2601_v20, 16  ;;  %v271_v30 = vadd.f32 %v270_v13, %v269_v50 }
  0x46   : > { %v689_v19 = vrot.slane %v355_v5, 1  ;;  %v2303_v25 = vpack.i.bf16 %v564_v7, %v560_v1  ;;  %v2681_v27 = vpack.c.bf16 %v329_v22, %v329_v22  ;;  %v322_v6 = vsel %vm320_vm14, %v321_v55, %v319_v23 }
  0x47   : > { %v574_v28 = vshll.u32 %v355_v5, 16  ;;  %v356_v29 = vpack.c.bf16 %v322_v6, %v322_v6  ;;  %v277_v31 = vrot.slane %v276_v15, 2  ;;  %2358 = vrsqrt.f32 %v2613_v26 }
  0x48   : > { %702 = vrot.lane.b32.xlu1 %v688_v4, %s2409_s22  ;;  %v582_v10 = vshll.u32 %v2681_v27, 16  ;;  %v568_v32 = vrot.slane %v566_v61, 4  ;;  %v572_v33 = vrot.slane %v570_v12, 4  ;;  %v486_v35 = vshll.u32 %v2601_v20, 16 }
  0x49   : > { %704 = vrot.lane.b32.xlu0 %v689_v19, %s2409_s22  ;;  %v576_v37 = vrot.slane %v574_v28, 4  ;;  %v578_v38 = vshll.u32 %v356_v29, 16  ;;  %v272_v8 = vrot.slane %v271_v30, 1  ;;  %v278_v39 = vadd.f32 %v277_v31, %v276_v15 }
  0x4a   : > { %v584_v40 = vrot.slane %v582_v10, 4  ;;  %v491_v42 = vshrl.u32 %v2604_v21, 16  ;;  %v494_v46 = vshll.u32 %v2604_v21, 16  ;;  %v2308_v47 = vpack.i.bf16 %v572_v33, %v568_v32 }
  0x4b   : > { %v580_v43 = vrot.slane %v578_v38, 4  ;;  %v2692_v44 = vadd.f32 %v272_v8, %v271_v30  ;;  %v279_v45 = vrot.slane %v278_v39, 1  ;;  %v485_v49 = vrot.slane %v483_v24, 5 }
  0x4c   : > { %2304 = vrot.lane.b32.xlu1 %v2303_v25, %s2410_s23  ;;  %v488_v51 = vrot.slane %v486_v35, 6  ;;  %v420_v52 = vrot.slane %v355_v5, 6  ;;  %v690_v54 = vrot.slane %v356_v29, 1  ;;  %v493_v57 = vrot.slane %v491_v42, 5 }
  0x4d   : > { %610 = vrot.lane.b32.xlu0 %v584_v40, %s2410_s23  ;;  %v2313_v55 = vpack.i.bf16 %v580_v43, %v576_v37  ;;  %v2696_v50 = vadd.f32 %v279_v45, %v278_v39  ;;  %2360 = vrsqrt.f32 %v2692_v44  ;;  %v691_v56 = vrot.slane %v2681_v27, 1 }
  0x4e   : > { %v489_v58 = vor.u32 %v488_v51, %v485_v49  ;;  %v496_v59 = vrot.slane %v494_v46, 6  ;;  %v2705_v60 = vsel %vm728_vm15, %v2496_v14, %v420_v52  ;;  %vm332_vm1 = vcmp.eq.f32.partialorder %v2613_v26, inf }
  0x4f   : > { %2362 = vrsqrt.f32 %v2696_v50  ;;  %v335_v1 = vand.u32 2147483648, %v2613_v26  ;;  %v416_v2 = vrot.slane %v2628_v36, 6  ;;  %v417_v61 = vrot.slane %v2647_v48, 6 }
  0x50   : > { %2314 = vrot.lane.b32.xlu1 %v2313_v55, %s2410_s23  ;;  %vm334_vm2 = vcmp.eq.f32.partialorder %v2613_v26, 0.0  ;;  %v418_v5 = vrot.slane %v2636_v41, 6  ;;  %v419_v7 = vrot.slane %v2655_v53, 6  ;;  %v2718_v14 = vcombine.high %v2604_v21, %v2604_v21 }
  0x51   : > { %2309 = vrot.lane.b32.xlu0 %v2308_v47, %s2410_s23  ;;  %v2359_v62 = vpop.eup %2358  ;;  %v2722_v11 = vsel %vm728_vm15, %v2488_v9, %v416_v2  ;;  %v2726_v36 = vsel %vm728_vm15, %v2501_v18, %v417_v61  ;;  %v421_v48 = vrot.slane %v356_v29, 6  ;;  %v497_v41 = vor.u32 %v496_v59, %v493_v57 }
  0x52   : > { %v331_v4 = vmul.f32 %v2359_v62, %v2613_v26  ;;  %v2732_v63 = vsel %vm728_vm15, %v2525_v0, %v418_v5  ;;  %v2736_v12 = vsel %vm728_vm15, %v2534_v16, %v419_v7  ;;  %vm339_vm3 = vcmp.eq.f32.partialorder %v2692_v44, inf }
  0x53   : > { %v2740_v13 = vsel %vm728_vm15, %v2538_v17, %v421_v48  ;;  %v499_v0 = vshrl.u32 %v2718_v14, 16  ;;  %v422_v19 = vrot.slane %v2681_v27, 6  ;;  %vm341_vm4 = vcmp.eq.f32.partialorder %v2692_v44, 0.0 }
  0x54   : > { %706 = vrot.lane.b32.xlu1 %v690_v54, %s2409_s22  ;;  %v333_v53 = vsel %vm332_vm1, %v2613_v26, %v331_v4  ;;  %v342_v26 = vand.u32 2147483648, %v2692_v44  ;;  %v648_v17 = vrot.slane %v2601_v20, 3  ;;  %v502_v22 = vshll.u32 %v2718_v14, 16 }
  0x55   : > { %708 = vrot.lane.b32.xlu0 %v691_v56, %s2409_s22  ;;  %v336_v9 = vsel %vm334_vm2, %v335_v1, %v333_v53  ;;  %vm346_vm5 = vcmp.eq.f32.partialorder %v2696_v50, inf  ;;  %v349_v24 = vand.u32 2147483648, %v2696_v50  ;;  %v2756_v25 = vsel %vm728_vm15, %v2549_v34, %v422_v19 }
  0x56   : > { %v358_v18 = vpack.c.bf16 %v336_v9, %v336_v9  ;;  %vm348_vm6 = vcmp.eq.f32.partialorder %v2696_v50, 0.0  ;;  %v501_v31 = vrot.slane %v499_v0, 5  ;;  %v504_v34 = vrot.slane %v502_v22, 6 }
  0x57   : > { %v2361_v15 = vpop.eup %2360  ;;  %v651_v46 = vrot.slane %v2408_v3, 3  ;;  %v695_v47 = vrot.slane %v2408_v3, 1  ;;  %v649_v49 = vrot.slane %v2604_v21, 3  ;;  %v509_v56 = vrot.slane %v2408_v3, 5 }
  0x58   : > { %528 = vrot.lane.b32.xlu1 %v489_v58, %s2410_s23  ;;  %v338_v16 = vmul.f32 %v2361_v15, %v2692_v44  ;;  %v423_v27 = vrot.slane %v358_v18, 6  ;;  %v586_v28 = vshll.u32 %v358_v18, 16  ;;  %v692_v33 = vrot.slane %v358_v18, 1 }
  0x59   : > { %530 = vrot.lane.b32.xlu0 %v497_v41, %s2410_s23  ;;  %v2363_v23 = vpop.eup %2362  ;;  %v505_v42 = vor.u32 %v504_v34, %v501_v31  ;;  %v512_v58 = vrot.slane %v2408_v3, 6  ;;  %v2328_v59 = vpack.i.bf16 %v695_v47, %v651_v46  ;;  %vm536_vm7 = vcmask 1039360  }
  0x5a   : > { %v340_v6 = vsel %vm339_vm3, %v2692_v44, %v338_v16  ;;  %v345_v29 = vmul.f32 %v2363_v23, %v2696_v50  ;;  %v2763_v10 = vsel %vm728_vm15, %v2601_v20, %v423_v27  ;;  %v588_v38 = vrot.slane %v586_v28, 4 }
  0x5b   : > { %v343_v30 = vsel %vm341_vm4, %v342_v26, %v340_v6  ;;  %v597_v44 = vrot.slane %v2408_v3, 4  ;;  %v513_v62 = vor.u32 %v512_v58, %v509_v56  ;;  %vm759_vm8 = vcmask 1042432  }
  0x5c   : > { %v359_v32 = vpack.c.bf16 %v343_v30, %v343_v30  ;;  %v347_v35 = vsel %vm346_vm5, %v2696_v50, %v345_v29  ;;  %vm760_vm9 = vsmask.f32 2304  ;;  %vm674_vm10 = vcmask 1031168  }
  0x5d   : > { %666 = vrot.lane.b32.xlu0 %v648_v17, %s2409_s22  ;;  %v350_v37 = vsel %vm348_vm6, %v349_v24, %v347_v35  ;;  %vm772_vm11 = vcmask 1044480   ;;  %vm773_vm12 = vsmask.f32 4352  ;;  %vm816_vm13 = vcmask 1046528   ;;  %vm2798_vm2 = vmand %vm759_vm8, %vm760_vm9 }
  0x5e   : > { %v590_v8 = vshll.u32 %v359_v32, 16  ;;  %v360_v39 = vpack.c.bf16 %v350_v37, %v350_v37  ;;  %v424_v52 = vrot.slane %v359_v32, 6  ;;  %v693_v57 = vrot.slane %v359_v32, 1  ;;  %vm2810_vm3 = vmand %vm772_vm11, %vm773_vm12 }
  0x5f   : > { %vm893_vm14 = vsmask.f32 3328  ;;  %vm896_vm1 = vsmask.f32 7424  ;;  %vm963_vm6 = vcmask 1047552   ;;  %vm959_vm8 = vcmask 121856  }
  0x60   : > { %v592_v40 = vrot.slane %v590_v8, 4  ;;  %v594_v43 = vshll.u32 %v360_v39, 16  ;;  %v425_v55 = vrot.slane %v360_v39, 6  ;;  %v2776_v50 = vsel %vm728_vm15, %v2604_v21, %v424_v52  ;;  %vm2852_vm4 = vmand %vm210_vm0, %vm893_vm14 }
  0x61   : > { %710 = vrot.lane.b32.xlu0 %v692_v33, %s2409_s22  ;;  %v650_v21 = vrot.slane %v2718_v14, 3  ;;  %v694_v1 = vrot.slane %v360_v39, 1  ;;  %vm1169_vm9 = vcmask 752640   ;;  %vm1542_vm12 = vcmask 195584  }
  0x62   : > { %v2318_v20 = vpack.i.bf16 %v592_v40, %v588_v38  ;;  %v596_v45 = vrot.slane %v594_v43, 4  ;;  %v2780_v54 = vsel %vm728_vm15, %v2718_v14, %v425_v55  ;;  %vm895_vm15 = vcmask 1047556  }
  0x63   : > { %vm897_vm5 = vmand %vm895_vm15, %vm896_vm1  ;;  %vm1801_vm14 = vcmask 982016   ;;  %vm1915_vm15 = vcmask 687104  }
  0x64   : > { %2319 = vrot.lane.b32.xlu1 %v2318_v20, %s2410_s23  ;;  %v2323_v51 = vpack.i.bf16 %v597_v44, %v596_v45  ;;  %vm2883_vm0 = vmor %vm897_vm5, %vm2852_vm4 }
  0x65   : > { %532 = vrot.lane.b32.xlu0 %v505_v42, %s2410_s23 }
  0x68   : > { %668 = vrot.lane.b32.xlu1 %v649_v49, %s2409_s22 }
  0x69   : > { %2324 = vrot.lane.b32.xlu0 %v2323_v51, %s2410_s23 }
  0x6c   : > { %712 = vrot.lane.b32.xlu1 %v693_v57, %s2409_s22 }
  0x6d   : > { %2329 = vrot.lane.b32.xlu0 %v2328_v59, %s2409_s22 }
  0x70   : > { %534 = vrot.lane.b32.xlu1 %v513_v62, %s2410_s23 }
  0x74   : > { %670 = vrot.lane.b32.xlu1 %v650_v21, %s2409_s22 }
  0x78   : > { %714 = vrot.lane.b32.xlu1 %v694_v1, %s2409_s22 }
  0x8b   : > { %v653_v2 = vpop.permute.xlu1 %652 }
  0x8e   : > { %v655_v61 = vpop.permute.xlu0 %654 }
  0x8f   : > { %v661_v4 = vpop.permute.xlu1 %660  ;;  %v675_v38 = vsel %vm674_vm10, %v653_v2, %v655_v61 }
  0x98   : > { %v657_v7 = vpop.permute.xlu1 %656 }
  0x99   : > { %v676_v8 = vsel %vm674_vm10, %v655_v61, %v657_v7 }
  0x9a   : > { %v515_v5 = vpop.permute.xlu0 %514 }
  0x9d   : > { %v519_v41 = vpop.permute.xlu1 %518 }
  0x9e   : > { %v523_v48 = vpop.permute.xlu0 %522 }
  0xa1   : > { %v525_v18 = vpop.permute.xlu1 %524 }
  0xa2   : > { %v659_v53 = vpop.permute.xlu0 %658  ;;  %v541_v27 = vsel %vm536_vm7, %v523_v48, %v525_v18 }
  0xa3   : > { %v677_v39 = vsel %vm674_vm10, %v657_v7, %v659_v53  ;;  %v678_v40 = vsel %vm674_vm10, %v659_v53, %v661_v4  ;;  %v766_v42 = vsel %vm2798_vm2, %v2705_v60, %v541_v27 }
  0xa5   : > { %v521_v26 = vpop.permute.xlu1 %520 }
  0xa6   : > { %v517_v9 = vpop.permute.xlu0 %516  ;;  %v539_v28 = vsel %vm536_vm7, %v519_v41, %v521_v26  ;;  %v540_v29 = vsel %vm536_vm7, %v521_v26, %v523_v48 }
  0xa7   : > { %v537_v6 = vsel %vm536_vm7, %v515_v5, %v517_v9  ;;  %v538_v31 = vsel %vm536_vm7, %v517_v9, %v519_v41  ;;  %v764_v44 = vsel %vm2798_vm2, %v2732_v63, %v539_v28  ;;  %v765_v46 = vsel %vm2798_vm2, %v2736_v12, %v540_v29  ;;  %v899_v29 = vld [vmem:[#allocation2 + $0x28] sm:$0xff] }
  0xa8   : > { %v762_v43 = vsel %vm2798_vm2, %v2722_v11, %v537_v6  ;;  %v763_v45 = vsel %vm2798_vm2, %v2726_v36, %v538_v31 }
  0xa9   : > { %v2796_v14 = vpop.permute.xlu1 %664 }
  0xaa   : > { %v2792_v15 = vpop.permute.xlu0 %526 }
  0xab   : > { %v542_v32 = vsel %vm536_vm7, %v525_v18, %v2792_v15 }
  0xac   : > { %v767_v60 = vsel %vm2798_vm2, %v2740_v13, %v542_v32 }
  0xae   : > { %v2794_v0 = vpop.permute.xlu0 %662 }
  0xaf   : > { %v679_v63 = vsel %vm674_vm10, %v661_v4, %v2794_v0 }
  0xb3   : > { %v697_v19 = vpop.permute.xlu0 %696 }
  0xb6   : > { %v699_v16 = vpop.permute.xlu1 %698 }
  0xb7   : > { %v701_v17 = vpop.permute.xlu0 %700  ;;  %v718_v55 = vsel %vm674_vm10, %v697_v19, %v699_v16 }
  0xb8   : > { %v719_v12 = vsel %vm674_vm10, %v699_v16, %v701_v17 }
  0xba   : > { %v703_v22 = vpop.permute.xlu1 %702 }
  0xbb   : > { %v705_v23 = vpop.permute.xlu0 %704  ;;  %v720_v13 = vsel %vm674_vm10, %v701_v17, %v703_v22 }
  0xbc   : > { %v721_v58 = vsel %vm674_vm10, %v703_v22, %v705_v23 }
  0xbe   : > { %v2305_v30 = vpop.permute.xlu1 %2304 }
  0xbf   : > { %v2307_v34 = vunpack.i.h.bf16 %v2305_v30  ;;  %v2306_v35 = vunpack.i.l.bf16 %v2305_v30  ;;  %v2814_v37 = vpop.permute.xlu0 %610  ;;  %v902_v30 = vld [vmem:[#allocation2 + $0x30] sm:$0xff] }
  0xc1   : > { %v620_v20 = vsel %vm536_vm7, %v2306_v35, %v2307_v34  ;;  %v680_v35 = vsel %vm674_vm10, %v2794_v0, %v2796_v14 }
  0xc2   : > { %v775_v11 = vsel %vm2810_vm3, %v762_v43, %v620_v20  ;;  %v2315_v47 = vpop.permute.xlu1 %2314  ;;  %v905_v20 = vld [vmem:[#allocation2 + $0x38] sm:$0xff] }
  0xc3   : > { %v788_v49 = vsel %vm772_vm11, %v775_v11, %v675_v38  ;;  %v2317_v51 = vunpack.i.h.bf16 %v2315_v47  ;;  %v2316_v52 = vunpack.i.l.bf16 %v2315_v47  ;;  %v2310_v36 = vpop.permute.xlu0 %2309 }
  0xc4   : > { %v2312_v57 = vunpack.i.h.bf16 %v2310_v36  ;;  %v2311_v56 = vunpack.i.l.bf16 %v2310_v36  ;;  %v818_v59 = vsel %vm816_vm13, %v788_v49, %v718_v55 }
  0xc5   : > { %v624_v62 = vsel %vm536_vm7, %v2316_v52, %v2317_v51  ;;  %v625_v7 = vsel %vm536_vm7, %v2317_v51, %v2814_v37 }
  0xc6   : > { %v621_v1 = vsel %vm536_vm7, %v2307_v34, %v2311_v56  ;;  %v622_v2 = vsel %vm536_vm7, %v2311_v56, %v2312_v57  ;;  %v623_v61 = vsel %vm536_vm7, %v2312_v57, %v2316_v52  ;;  %v707_v4 = vpop.permute.xlu1 %706  ;;  %v779_v5 = vsel %vm2810_vm3, %v766_v42, %v624_v62 }
  0xc7   : > { %v776_v48 = vsel %vm2810_vm3, %v763_v45, %v621_v1  ;;  %v777_v41 = vsel %vm2810_vm3, %v764_v44, %v622_v2  ;;  %v778_v53 = vsel %vm2810_vm3, %v765_v46, %v623_v61  ;;  %v2871_v9 = vpop.permute.xlu0 %708  ;;  %v722_v16 = vsel %vm674_vm10, %v705_v23, %v707_v4 }
  0xc8   : > { %v791_v18 = vsel %vm772_vm11, %v776_v48, %v676_v8  ;;  %v794_v26 = vsel %vm772_vm11, %v777_v41, %v677_v39  ;;  %v797_v19 = vsel %vm772_vm11, %v778_v53, %v678_v40  ;;  %v800_v6 = vsel %vm772_vm11, %v779_v5, %v679_v63 }
  0xc9   : > { %v820_v17 = vsel %vm816_vm13, %v791_v18, %v719_v12  ;;  %v822_v22 = vsel %vm816_vm13, %v794_v26, %v720_v13  ;;  %v824_v27 = vsel %vm816_vm13, %v797_v19, %v721_v58  ;;  %v723_v38 = vsel %vm674_vm10, %v707_v4, %v2871_v9 }
  0xca   : > { %v2131_v31 = vcombine.low %v818_v59, %v820_v17  ;;  %v2132_v32 = vcombine.low %v822_v22, %v824_v27  ;;  %v2136_v34 = vcombine.high %v818_v59, %v820_v17  ;;  %v2137_v23 = vcombine.high %v822_v22, %v824_v27  ;;  %v529_v52 = vpop.permute.xlu1 %528 }
  0xcb   : > { %v780_v8 = vsel %vm2810_vm3, %v767_v60, %v625_v7  ;;  %v531_v39 = vpop.permute.xlu0 %530  ;;  %v826_v44 = vsel %vm816_vm13, %v800_v6, %v722_v16  ;;  %v543_v1 = vsel %vm536_vm7, %v2792_v15, %v529_v52 }
  0xcc   : > { %v803_v40 = vsel %vm772_vm11, %v780_v8, %v680_v35  ;;  %v900_v42 = vsel %vm2883_vm0, %v2136_v34, %v899_v29  ;;  %v903_v43 = vsel %vm2883_vm0, %v2137_v23, %v902_v30  ;;  %v544_v57 = vsel %vm536_vm7, %v529_v52, %v531_v39 }
  0xcd   : > { %v828_v0 = vsel %vm816_vm13, %v803_v40, %v723_v38  ;;  %901 = vst [vmem:[#allocation2 + $0x28] sm:$0xff] %v900_v42  ;;  %904 = vst [vmem:[#allocation2 + $0x30] sm:$0xff] %v903_v43  ;;  %v2901_v45 = vcombine.low %v822_v22, %v903_v43  ;;  %v2903_v46 = vcombine.high %v2131_v31, %v900_v42  ;;  %v908_v22 = vld [vmem:[#allocation2 + $0x40] sm:$0xff] }
  0xce   : > { %v2133_v60 = vcombine.low %v826_v44, %v828_v0  ;;  %v2138_v11 = vcombine.high %v826_v44, %v828_v0  ;;  %v2905_v47 = vcombine.high %v2132_v32, %v903_v43  ;;  %v2909_v49 = vcombine.low %v818_v59, %v900_v42 }
  0xcf   : > { %v667_v63 = vpop.permute.xlu0 %666  ;;  %948 = vrot.lane.b32.xlu1 %v2901_v45, %s2411_s24  ;;  %946 = vrot.lane.b32.xlu0 %v2903_v46, %s2411_s24  ;;  %v769_v58 = vsel %vm2798_vm2, %v2763_v10, %v544_v57  ;;  %v768_v10 = vsel %vm2798_vm2, %v2756_v25, %v543_v1 }
  0xd0   : > { %889 = vst [vmem:[#allocation2 + $0x10] sm:$0xff] %v2133_v60  ;;  %v906_v51 = vsel %vm2883_vm0, %v2138_v11, %v905_v20  ;;  %v911_v11 = vld [vmem:[#allocation2 + $0x48] sm:$0xff] }
  0xd1   : > { %907 = vst [vmem:[#allocation2 + $0x38] sm:$0xff] %v906_v51  ;;  %v2913_v36 = vcombine.low %v826_v44, %v906_v51  ;;  %v2915_v55 = vcombine.high %v2133_v60, %v906_v51 }
  0xd3   : > { %v711_v12 = vpop.permute.xlu0 %710  ;;  %950 = vrot.lane.b32.xlu0 %v2905_v47, %s2411_s24 }
  0xd4   : > { %v724_v53 = vsel %vm674_vm10, %v2871_v9, %v711_v12 }
  0xd6   : > { %v2320_v56 = vpop.permute.xlu1 %2319 }
  0xd7   : > { %v533_v13 = vpop.permute.xlu0 %532  ;;  %944 = vrot.lane.b32.xlu0 %v2909_v49, %s2411_s24  ;;  %v2322_v59 = vunpack.i.h.bf16 %v2320_v56  ;;  %v2321_v62 = vunpack.i.l.bf16 %v2320_v56 }
  0xd8   : > { %v2335_v21 = vld [vmem:[#allocation2 + $0x10] ss:$40 sps:$4 sm:$0xff]  }
  0xd9   : > { %v626_v2 = vsel %vm536_vm7, %v2814_v37, %v2321_v62  ;;  %v627_v61 = vsel %vm536_vm7, %v2321_v62, %v2322_v59  ;;  %952 = vrot.lane.b32.xlu1 %v2335_v21, %s2411_s24  ;;  %v681_v37 = vsel %vm674_vm10, %v2796_v14, %v667_v63  ;;  %v545_v14 = vsel %vm536_vm7, %v531_v39, %v533_v13 }
  0xda   : > { %v669_v4 = vpop.permute.xlu1 %668  ;;  %v782_v5 = vsel %vm2810_vm3, %v769_v58, %v627_v61  ;;  %v781_v48 = vsel %vm2810_vm3, %v768_v10, %v626_v2  ;;  %v770_v30 = vsel %vm2798_vm2, %v2776_v50, %v545_v14 }
  0xdb   : > { %v2325_v7 = vpop.permute.xlu0 %2324  ;;  %1163 = vrot.lane.b32.xlu0 %v2901_v45, %s2412_s25  ;;  %v682_v15 = vsel %vm674_vm10, %v667_v63, %v669_v4  ;;  %v806_v25 = vsel %vm772_vm11, %v781_v48, %v681_v37 }
  0xdc   : > { %v809_v41 = vsel %vm772_vm11, %v782_v5, %v682_v15  ;;  %v2326_v26 = vunpack.i.l.bf16 %v2325_v7  ;;  %v2327_v16 = vunpack.i.h.bf16 %v2325_v7  ;;  %v830_v17 = vsel %vm816_vm13, %v806_v25, %v724_v53  ;;  %v2141_v53 = vld [vmem:[%s3146_s1 + $0x2] sm:$0x3] }
  0xdd   : > { %1161 = vrot.lane.b32.xlu1 %v2903_v46, %s2412_s25 }
  0xde   : > { %v713_v18 = vpop.permute.xlu1 %712  ;;  %v628_v32 = vsel %vm536_vm7, %v2322_v59, %v2326_v26  ;;  %v629_v35 = vsel %vm536_vm7, %v2326_v26, %v2327_v16  ;;  %v2342_v59 = vld [vmem:[#allocation2 + $0x14] ss:$40 sps:$4 sm:$0xff]  }
  0xdf   : > { %1167 = vrot.lane.b32.xlu0 %v2335_v21, %s2412_s25  ;;  %v725_v19 = vsel %vm674_vm10, %v711_v12, %v713_v18  ;;  %v2330_v9 = vpop.permute.xlu0 %2329  ;;  %v783_v39 = vsel %vm2810_vm3, %v770_v30, %v628_v32 }
  0xe0   : > { %v832_v27 = vsel %vm816_vm13, %v809_v41, %v725_v19  ;;  %v2331_v38 = vunpack.i.l.bf16 %v2330_v9  ;;  %v2332_v43 = vunpack.i.h.bf16 %v2330_v9 }
  0xe1   : > { %v2134_v6 = vcombine.low %v830_v17, %v832_v27  ;;  %v2139_v29 = vcombine.high %v830_v17, %v832_v27  ;;  %1165 = vrot.lane.b32.xlu1 %v2905_v47, %s2412_s25 }
  0xe2   : > { %v535_v31 = vpop.permute.xlu1 %534 }
  0xe3   : > { %1308 = vrot.lane.b32.xlu0 %v2905_v47, %s2413_s26  ;;  %890 = vst [vmem:[#allocation2 + $0x18] sm:$0xff] %v2134_v6  ;;  %v909_v34 = vsel %vm2883_vm0, %v2139_v29, %v908_v22  ;;  %v546_v23 = vsel %vm536_vm7, %v533_v13, %v535_v31  ;;  %vm954_vm7 = vcmask 900096  }
  0xe4   : > { %910 = vst [vmem:[#allocation2 + $0x40] sm:$0xff] %v909_v34  ;;  %v771_v50 = vsel %vm2798_vm2, %v2780_v54, %v546_v23 }
  0xe5   : > { %1159 = vrot.lane.b32.xlu1 %v2909_v49, %s2412_s25  ;;  %v784_v40 = vsel %vm2810_vm3, %v771_v50, %v629_v35 }
  0xe6   : > { %v671_v8 = vpop.permute.xlu1 %670 }
  0xe7   : > { %1312 = vrot.lane.b32.xlu0 %v2915_v55, %s2413_s26  ;;  %v683_v42 = vsel %vm674_vm10, %v669_v4, %v671_v8  ;;  %v684_v44 = vsel %vm674_vm10, %v671_v8, %v2331_v38 }
  0xe8   : > { %v812_v24 = vsel %vm772_vm11, %v783_v39, %v683_v42  ;;  %v815_v54 = vsel %vm772_vm11, %v784_v40, %v684_v44  ;;  %vm1428_vm11 = vcmask 490496  }
  0xe9   : > { %1310 = vrot.lane.b32.xlu1 %v2913_v36, %s2413_s26 }
  0xea   : > { %v715_v20 = vpop.permute.xlu1 %714 }
  0xeb   : > { %1306 = vrot.lane.b32.xlu0 %v2901_v45, %s2413_s26  ;;  %v726_v0 = vsel %vm674_vm10, %v713_v18, %v715_v20  ;;  %v727_v33 = vsel %vm674_vm10, %v715_v20, %v2332_v43  ;;  %v2336_v60 = vld [vmem:[#allocation2 + $0x18] ss:$40 sps:$4 sm:$0xff]   ;;  %v2341_v56 = vld [vmem:[#allocation2 + $0x1c] ss:$40 sps:$4 sm:$0xff]   ;;  %vm1316_vm10 = vcmask 343040  }
  0xec   : > { %v834_v63 = vsel %vm816_vm13, %v812_v24, %v726_v0  ;;  %v836_v51 = vsel %vm816_vm13, %v815_v54, %v727_v33  ;;  %v2337_v28 = vld [vmem:[#allocation2 + $0x18] ss:$40 sps:$4 sm:$0xff]   ;;  %v2151_v20 = vld [vmem:[%s3146_s1 + $0x4] sm:$0x3] }
  0xed   : > { %v2135_v52 = vcombine.low %v834_v63, %v836_v51  ;;  %v2140_v12 = vcombine.high %v834_v63, %v836_v51  ;;  %1314 = vrot.lane.b32.xlu1 %v2336_v60, %s2413_s26 }
  0xef   : > { %1422 = vrot.lane.b32.xlu0 %v2913_v36, %s2414_s27  ;;  %891 = vst [vmem:[#allocation2 + $0x20] sm:$0xff] %v2135_v52  ;;  %v912_v57 = vsel %vm2883_vm0, %v2140_v12, %v911_v11 }
  0xf0   : > { %913 = vst [vmem:[#allocation2 + $0x48] sm:$0xff] %v912_v57 }
  0xf1   : > { %1420 = vrot.lane.b32.xlu1 %v2905_v47, %s2414_s27 }
  0xf3   : > { %1426 = vrot.lane.b32.xlu0 %v2336_v60, %s2414_s27 }
  0xf5   : > { %1424 = vrot.lane.b32.xlu1 %v2915_v55, %s2414_s27 }
  0xf7   : > { %1534 = vrot.lane.b32.xlu0 %v2905_v47, %s2415_s28  ;;  %v2343_v13 = vld [vmem:[#allocation2 + $0x24] ss:$40 sps:$4 sm:$0xff]   ;;  %v2339_v58 = vld [vmem:[#allocation2 + $0x20] ss:$40 sps:$4 sm:$0xff]  }
  0xf9   : > { %1418 = vrot.lane.b32.xlu1 %v2901_v45, %s2414_s27 }
  0xfb   : > { %1538 = vrot.lane.b32.xlu0 %v2915_v55, %s2415_s28 }
  0xfd   : > { %1536 = vrot.lane.b32.xlu1 %v2913_v36, %s2415_s28  ;;  %v2419_v36 = vmov 65535  }
  0xfe   : > { %v964_v55 = vsel %vm816_vm13, 4294967295, %v2419_v36  ;;  %v2155_v36 = vld [vmem:[%s3146_s1 + $0x8] sm:$0x3]  ;;  %vm1689_vm13 = vcmask 834560  }
  0xff   : > { %1532 = vrot.lane.b32.xlu0 %v2901_v45, %s2415_s28  ;;  %v2993_v1 = vsel %vm963_vm6, %v964_v55, 0 }
 0x100   : > { %v1067_v48 = vand.u32 %v2903_v46, %v2993_v1  ;;  %v1064_v19 = vand.u32 %v2909_v49, %v2993_v1  ;;  %v1073_v46 = vand.u32 %v2905_v47, %v2993_v1  ;;  %v1070_v49 = vand.u32 %v2901_v45, %v2993_v1  ;;  %v918_v45 = vld [vmem:[%s3146_s1] sm:$0x3] }
 0x101   : > { %1540 = vrot.lane.b32.xlu1 %v2336_v60, %s2415_s28 }
 0x103   : > { %1683 = vrot.lane.b32.xlu0 %v2341_v56, %s2416_s29 }
 0x105   : > { %1681 = vrot.lane.b32.xlu1 %v2337_v28, %s2416_s29 }
 0x107   : > { %1687 = vrot.lane.b32.xlu0 %v2343_v13, %s2416_s29 }
 0x109   : > { %1685 = vrot.lane.b32.xlu1 %v2339_v58, %s2416_s29 }
 0x10b   : > { %1793 = vrot.lane.b32.xlu0 %v2337_v28, %s2417_s30 }
 0x10d   : > { %1679 = vrot.lane.b32.xlu1 %v2342_v59, %s2416_s29  ;;  %s2129_s29 = sshll.u32 %s2389_s9, 2 }
 0x10e   : > { %p174_p7 = scmp.lt.s32.totalorder %s2129_s29, 11 }
 0x10f   : > { %1797 = vrot.lane.b32.xlu0 %v2339_v58, %s2417_s30 }
 0x110   : > { %s3171_s29 = smov (!%p174_p7, %s2129_s29), 11 }
 0x111   : > { %1795 = vrot.lane.b32.xlu1 %v2341_v56, %s2417_s30 }
 0x113   : > { %1791 = vrot.lane.b32.xlu0 %v2342_v59, %s2417_s30 }
 0x115   : > { %1799 = vrot.lane.b32.xlu1 %v2343_v13, %s2417_s30  ;;  %s2249_s30 = smul.u32 12, %s3169_s10 }
 0x117   : > { %1909 = vrot.lane.b32.xlu0 %v2341_v56, %s2418_s3 }
 0x119   : > { %1907 = vrot.lane.b32.xlu1 %v2337_v28, %s2418_s3 }
 0x11b   : > { %1913 = vrot.lane.b32.xlu0 %v2343_v13, %s2418_s3 }
 0x11d   : > { %1911 = vrot.lane.b32.xlu1 %v2339_v58, %s2418_s3 }
 0x121   : > { %1905 = vrot.lane.b32.xlu1 %v2342_v59, %s2418_s3  ;;  %s177_s3 = sadd.s32 %s2249_s30, %s3171_s29 }
 0x122   : > { %s2130_s4 = sshll.u32 %s177_s3, 2 }
 0x123   : > { %s179_s7 = scalar_lea.vmem %s3147_s2, %s2130_s4 }
 0x141   : > { %v949_v62 = vpop.permute.xlu1 %948  ;;  %v947_v21 = vpop.permute.xlu0 %946 }
 0x142   : > { %v956_v2 = vsel %vm954_vm7, %v947_v21, %v949_v62 }
 0x143   : > { %v970_v61 = vand.u32 %v2993_v1, %v956_v2 }
 0x145   : > { %978 = vmatprep.subr.bf16.mxu0 %v970_v61  ;;  %v951_v4 = vpop.permute.xlu0 %950 }
 0x146   : > { %v957_v37 = vsel %vm954_vm7, %v949_v62, %v951_v4 }
 0x147   : > { %v973_v25 = vand.u32 %v2993_v1, %v957_v37 }
 0x149   : > { %v945_v5 = vpop.permute.xlu0 %944 }
 0x14a   : > { %v955_v7 = vsel %vm954_vm7, %v945_v5, %v947_v21 }
 0x14b   : > { %v967_v10 = vand.u32 %v2993_v1, %v955_v7  ;;  %v953_v15 = vpop.permute.xlu1 %952 }
 0x14c   : > { %v958_v41 = vsel %vm954_vm7, %v951_v4, %v953_v15 }
 0x14d   : > { %979 = vmatpush1.bf16.msra.mxu0 %v967_v10  ;;  %v1164_v18 = vpop.permute.xlu0 %1163  ;;  %v976_v26 = vand.u32 %v2993_v1, %v958_v41 }
 0x14e   : > { %1075 = vmatprep.subr.bf16.mxu0 %v1067_v48 }
 0x14f   : > { %v1162_v14 = vpop.permute.xlu1 %1161  ;;  %1019 = vmatprep.subr.bf16.mxu1 %v976_v26 }
 0x150   : > { %2147 = vmatmul.mubr.msk.bf16.vlgmr.msra.gmra.mrb[0].mxu0 %vm959_vm8, %v2141_v53  ;;  %1020 = vmatpush1.bf16.msra.mxu1 %v973_v25  ;;  %v1171_v16 = vsel %vm1169_vm9, %v1162_v14, %v1164_v18 }
 0x151   : > { %v1168_v17 = vpop.permute.xlu0 %1167  ;;  %1076 = vmatpush1.bf16.msra.mxu0 %v1064_v19  ;;  %1116 = vmatprep.subr.bf16.mxu1 %v1073_v46  ;;  %v1181_v22 = vand.u32 %v1171_v16, %v2993_v1 }
 0x152   : > { %1107 = vmatprep.mubr.bf16.mxu0 %v2408_v3 }
 0x153   : > { %v1166_v27 = vpop.permute.xlu1 %1165  ;;  %2148 = vmatmul.mubr.msk.bf16.vlgmr.msra.gmra.mrb[0].mxu1 %vm959_vm8, %v2141_v53  ;;  %1189 = vmatprep.subr.bf16.mxu0 %v1181_v22 }
 0x154   : > { %1117 = vmatpush1.bf16.msra.mxu1 %v1070_v49  ;;  %v1173_v47 = vsel %vm1169_vm9, %v1166_v27, %v1168_v17  ;;  %1148 = vmatprep.mubr.bf16.mxu1 %v2408_v3  ;;  %v1172_v34 = vsel %vm1169_vm9, %v1164_v18, %v1166_v27  ;;  %v2154_v18 = vld [vmem:[%s3146_s1 + $0x6] sm:$0x3] }
 0x155   : > { %v1309_v9 = vpop.permute.xlu0 %1308  ;;  %v1187_v6 = vand.u32 %v1173_v47, %v2993_v1  ;;  %v1184_v8 = vand.u32 %v1172_v34, %v2993_v1 }
 0x157   : > { %v1160_v29 = vpop.permute.xlu1 %1159  ;;  %1230 = vmatprep.subr.bf16.mxu1 %v1187_v6  ;;  %v2165_v6 = vld [vmem:[%s3146_s1 + $0xa] sm:$0x3] }
 0x158   : > { %v1170_v30 = vsel %vm1169_vm9, %v1160_v29, %v1162_v14 }
 0x159   : > { %v1313_v31 = vpop.permute.xlu0 %1312  ;;  %v1178_v32 = vand.u32 %v1170_v30, %v2993_v1 }
 0x15b   : > { %v1311_v23 = vpop.permute.xlu1 %1310 }
 0x15c   : > { %2149 = vmatmul.mubr.msk.bf16.vlgmr.msra.gmra.mrb[0].mxu0 %vm959_vm8, %v918_v45  ;;  %v1318_v35 = vsel %vm1316_vm10, %v1309_v9, %v1311_v23  ;;  %v1319_v60 = vsel %vm1316_vm10, %v1311_v23, %v1313_v31 }
 0x15d   : > { %1190 = vmatpush1.bf16.msra.mxu0 %v1178_v32  ;;  %v1307_v38 = vpop.permute.xlu0 %1306  ;;  %1221 = vmatprep.mubr.bf16.mxu0 %v2408_v3  ;;  %v1328_v50 = vand.u32 %v1318_v35, %v2993_v1  ;;  %v1331_v57 = vand.u32 %v1319_v60, %v2993_v1 }
 0x15e   : > { %v1317_v24 = vsel %vm1316_vm10, %v1307_v38, %v1309_v9 }
 0x15f   : > { %2150 = vmatmul.mubr.msk.bf16.vlgmr.msra.gmra.mrb[0].mxu1 %vm959_vm8, %v918_v45  ;;  %v1315_v39 = vpop.permute.xlu1 %1314  ;;  %1336 = vmatprep.subr.bf16.mxu0 %v1328_v50  ;;  %v1325_v33 = vand.u32 %v1317_v24, %v2993_v1 }
 0x160   : > { %1231 = vmatpush1.bf16.msra.mxu1 %v1184_v8  ;;  %v1320_v40 = vsel %vm1316_vm10, %v1313_v31, %v1315_v39  ;;  %1262 = vmatprep.mubr.bf16.mxu1 %v2408_v3 }
 0x161   : > { %v1423_v42 = vpop.permute.xlu0 %1422  ;;  %v1334_v43 = vand.u32 %v1320_v40, %v2993_v1  ;;  %v2169_v40 = vld [vmem:[%s3146_s1 + $0xe] sm:$0x3] }
 0x163   : > { %v1421_v44 = vpop.permute.xlu1 %1420  ;;  %1377 = vmatprep.subr.bf16.mxu1 %v1334_v43 }
 0x164   : > { %v1430_v54 = vsel %vm1428_vm11, %v1421_v44, %v1423_v42 }
 0x165   : > { %v1427_v0 = vpop.permute.xlu0 %1426  ;;  %v1440_v63 = vand.u32 %v1430_v54, %v2993_v1 }
 0x167   : > { %v1425_v11 = vpop.permute.xlu1 %1424 }
 0x168   : > { %2152 = vmatmul.mubr.msk.bf16.vlgmr.msra.gmra.mrb[0].mxu0 %vm959_vm8, %v2151_v20  ;;  %v1432_v51 = vsel %vm1428_vm11, %v1425_v11, %v1427_v0  ;;  %v1431_v21 = vsel %vm1428_vm11, %v1423_v42, %v1425_v11 }
 0x169   : > { %1337 = vmatpush1.bf16.msra.mxu0 %v1325_v33  ;;  %v1535_v52 = vpop.permute.xlu0 %1534  ;;  %1368 = vmatprep.mubr.bf16.mxu0 %v2408_v3  ;;  %v1446_v12 = vand.u32 %v1432_v51, %v2993_v1  ;;  %v1443_v10 = vand.u32 %v1431_v21, %v2993_v1 }
 0x16a   : > { %1448 = vmatprep.subr.bf16.mxu0 %v1440_v63  ;;  %v2168_v63 = vld [vmem:[%s3146_s1 + $0xc] sm:$0x3] }
 0x16b   : > { %v1419_v56 = vpop.permute.xlu1 %1418  ;;  %2153 = vmatmul.mubr.msk.bf16.vlgmr.msra.gmra.mrb[0].mxu1 %vm959_vm8, %v2151_v20 }
 0x16c   : > { %1378 = vmatpush1.bf16.msra.mxu1 %v1331_v57  ;;  %1409 = vmatprep.mubr.bf16.mxu1 %v2408_v3  ;;  %v1429_v13 = vsel %vm1428_vm11, %v1419_v56, %v1421_v44  ;;  %v2179_v57 = vld [vmem:[%s3146_s1 + $0x10] sm:$0x3] }
 0x16d   : > { %v1539_v28 = vpop.permute.xlu0 %1538  ;;  %1489 = vmatprep.subr.bf16.mxu1 %v1446_v12  ;;  %v1437_v62 = vand.u32 %v1429_v13, %v2993_v1 }
 0x16f   : > { %v1537_v58 = vpop.permute.xlu1 %1536 }
 0x170   : > { %v1544_v59 = vsel %vm1542_vm12, %v1535_v52, %v1537_v58  ;;  %v1545_v19 = vsel %vm1542_vm12, %v1537_v58, %v1539_v28 }
 0x171   : > { %v1533_v55 = vpop.permute.xlu0 %1532  ;;  %v1554_v2 = vand.u32 %v1544_v59, %v2993_v1  ;;  %v1557_v17 = vand.u32 %v1545_v19, %v2993_v1 }
 0x172   : > { %v1543_v48 = vsel %vm1542_vm12, %v1533_v55, %v1535_v52 }
 0x173   : > { %v1541_v61 = vpop.permute.xlu1 %1540  ;;  %v1551_v25 = vand.u32 %v1543_v48, %v2993_v1 }
 0x174   : > { %2161 = vmatmul.mubr.msk.bf16.vlgmr.msra.gmra.mrb[0].mxu0 %vm959_vm8, %v2155_v36  ;;  %v1546_v4 = vsel %vm1542_vm12, %v1539_v28, %v1541_v61 }
 0x175   : > { %1449 = vmatpush1.bf16.msra.mxu0 %v1437_v62  ;;  %v1684_v5 = vpop.permute.xlu0 %1683  ;;  %1480 = vmatprep.mubr.bf16.mxu0 %v2408_v3  ;;  %v1560_v7 = vand.u32 %v1546_v4, %v2993_v1 }
 0x176   : > { %1562 = vmatprep.subr.bf16.mxu0 %v1554_v2 }
 0x177   : > { %v1682_v15 = vpop.permute.xlu1 %1681  ;;  %2162 = vmatmul.mubr.msk.bf16.vlgmr.msra.gmra.mrb[0].mxu1 %vm959_vm8, %v2155_v36 }
 0x178   : > { %1490 = vmatpush1.bf16.msra.mxu1 %v1443_v10  ;;  %1521 = vmatprep.mubr.bf16.mxu1 %v2408_v3  ;;  %v1691_v53 = vsel %vm1689_vm13, %v1682_v15, %v1684_v5 }
 0x179   : > { %v1688_v37 = vpop.permute.xlu0 %1687  ;;  %1603 = vmatprep.subr.bf16.mxu1 %v1560_v7  ;;  %v1701_v14 = vand.u32 %v1691_v53, %v2993_v1 }
 0x17b   : > { %v1686_v41 = vpop.permute.xlu1 %1685 }
 0x17c   : > { %v1693_v16 = vsel %vm1689_vm13, %v1686_v41, %v1688_v37  ;;  %v1692_v31 = vsel %vm1689_vm13, %v1684_v5, %v1686_v41 }
 0x17d   : > { %v1794_v26 = vpop.permute.xlu0 %1793  ;;  %v1707_v22 = vand.u32 %v1693_v16, %v2993_v1  ;;  %v1704_v23 = vand.u32 %v1692_v31, %v2993_v1 }
 0x17f   : > { %v1680_v46 = vpop.permute.xlu1 %1679 }
 0x180   : > { %2163 = vmatmul.mubr.msk.bf16.vlgmr.msra.gmra.mrb[0].mxu0 %vm959_vm8, %v2154_v18  ;;  %v1690_v47 = vsel %vm1689_vm13, %v1680_v46, %v1682_v15 }
 0x181   : > { %1563 = vmatpush1.bf16.msra.mxu0 %v1551_v25  ;;  %1594 = vmatprep.mubr.bf16.mxu0 %v2408_v3  ;;  %v1798_v27 = vpop.permute.xlu0 %1797  ;;  %v1698_v45 = vand.u32 %v1690_v47, %v2993_v1 }
 0x182   : > { %1709 = vmatprep.subr.bf16.mxu0 %v1701_v14 }
 0x183   : > { %v1796_v49 = vpop.permute.xlu1 %1795  ;;  %2164 = vmatmul.mubr.msk.bf16.vlgmr.msra.gmra.mrb[0].mxu1 %vm959_vm8, %v2154_v18 }
 0x184   : > { %1604 = vmatpush1.bf16.msra.mxu1 %v1557_v17  ;;  %1635 = vmatprep.mubr.bf16.mxu1 %v2408_v3  ;;  %v1803_v9 = vsel %vm1801_vm14, %v1794_v26, %v1796_v49  ;;  %v1804_v24 = vsel %vm1801_vm14, %v1796_v49, %v1798_v27 }
 0x185   : > { %1750 = vmatprep.subr.bf16.mxu1 %v1707_v22  ;;  %v1792_v30 = vpop.permute.xlu0 %1791  ;;  %v1813_v32 = vand.u32 %v1803_v9, %v2993_v1  ;;  %v1816_v0 = vand.u32 %v1804_v24, %v2993_v1 }
 0x186   : > { %v1802_v8 = vsel %vm1801_vm14, %v1792_v30, %v1794_v26 }
 0x187   : > { %v1800_v29 = vpop.permute.xlu1 %1799  ;;  %v1810_v44 = vand.u32 %v1802_v8, %v2993_v1 }
 0x188   : > { %v1805_v34 = vsel %vm1801_vm14, %v1798_v27, %v1800_v29 }
 0x189   : > { %v1819_v35 = vand.u32 %v1805_v34, %v2993_v1  ;;  %v1910_v50 = vpop.permute.xlu0 %1909 }
 0x18b   : > { %v1908_v38 = vpop.permute.xlu1 %1907 }
 0x18c   : > { %2166 = vmatmul.mubr.msk.bf16.vlgmr.msra.gmra.mrb[0].mxu0 %vm959_vm8, %v2165_v6  ;;  %v1917_v39 = vsel %vm1915_vm15, %v1908_v38, %v1910_v50 }
 0x18d   : > { %1710 = vmatpush1.bf16.msra.mxu0 %v1698_v45  ;;  %1741 = vmatprep.mubr.bf16.mxu0 %v2408_v3  ;;  %v1914_v43 = vpop.permute.xlu0 %1913  ;;  %v1927_v54 = vand.u32 %v1917_v39, %v2993_v1 }
 0x18e   : > { %1821 = vmatprep.subr.bf16.mxu0 %v1813_v32 }
 0x18f   : > { %2167 = vmatmul.mubr.msk.bf16.vlgmr.msra.gmra.mrb[0].mxu1 %vm959_vm8, %v2165_v6  ;;  %v1912_v42 = vpop.permute.xlu1 %1911 }
 0x190   : > { %1751 = vmatpush1.bf16.msra.mxu1 %v1704_v23  ;;  %1782 = vmatprep.mubr.bf16.mxu1 %v2408_v3  ;;  %v1919_v20 = vsel %vm1915_vm15, %v1912_v42, %v1914_v43  ;;  %v1918_v52 = vsel %vm1915_vm15, %v1910_v50, %v1912_v42 }
 0x191   : > { %1862 = vmatprep.subr.bf16.mxu1 %v1819_v35  ;;  %v1933_v33 = vand.u32 %v1919_v20, %v2993_v1  ;;  %v1930_v12 = vand.u32 %v1918_v52, %v2993_v1 }
 0x193   : > { %v1906_v60 = vpop.permute.xlu1 %1905 }
 0x194   : > { %v1916_v11 = vsel %vm1915_vm15, %v1906_v60, %v1908_v38 }
 0x195   : > { %v1924_v51 = vand.u32 %v1916_v11, %v2993_v1 }
 0x198   : > { %2175 = vmatmul.mubr.msk.bf16.vlgmr.msra.gmra.mrb[0].mxu0 %vm959_vm8, %v2169_v40 }
 0x199   : > { %1822 = vmatpush1.bf16.msra.mxu0 %v1810_v44  ;;  %1853 = vmatprep.mubr.bf16.mxu0 %v2408_v3 }
 0x19a   : > { %1935 = vmatprep.subr.bf16.mxu0 %v1927_v54 }
 0x19b   : > { %2176 = vmatmul.mubr.msk.bf16.vlgmr.msra.gmra.mrb[0].mxu1 %vm959_vm8, %v2169_v40 }
 0x19c   : > { %1863 = vmatpush1.bf16.msra.mxu1 %v1816_v0  ;;  %1894 = vmatprep.mubr.bf16.mxu1 %v2408_v3 }
 0x19d   : > { %1976 = vmatprep.subr.bf16.mxu1 %v1933_v33 }
 0x1a4   : > { %2177 = vmatmul.mubr.msk.bf16.vlgmr.msra.gmra.mrb[0].mxu0 %vm959_vm8, %v2168_v63 }
 0x1a5   : > { %1936 = vmatpush1.bf16.msra.mxu0 %v1924_v51  ;;  %1967 = vmatprep.mubr.bf16.mxu0 %v2408_v3 }
 0x1a7   : > { %2178 = vmatmul.mubr.msk.bf16.vlgmr.msra.gmra.mrb[0].mxu1 %vm959_vm8, %v2168_v63 }
 0x1a8   : > { %1977 = vmatpush1.bf16.msra.mxu1 %v1930_v12  ;;  %2008 = vmatprep.mubr.bf16.mxu1 %v2408_v3 }
 0x1b0   : > { %2180 = vmatmul.mubr.msk.bf16.vlgmr.msra.gmra.mrb[0].mxu0 %vm959_vm8, %v2179_v57 }
 0x1b3   : > { %2181 = vmatmul.mubr.msk.bf16.vlgmr.msra.gmra.mrb[0].mxu1 %vm959_vm8, %v2179_v57 }
 0x283   : > { %v1969_v1 = vpop.f32.mrb[0].mxu0 }
 0x284   : > { %v1971_v3 = vpop.f32.mrb[1].mxu0 }
 0x285   : > { %v2033_v56 = vcombine.low %v1969_v1, %v1971_v3  ;;  %v1973_v28 = vpop.f32.mrb[2].mxu0 }
 0x286   : > { %v1974_v13 = vpop.f32.mrb[3].mxu0  ;;  %v2010_v58 = vpop.f32.mrb[0].mxu1 }
 0x287   : > { %2037 = vst [vmem:[%s179_s7] sm:$0xff] %v2033_v56  ;;  %v2012_v59 = vpop.f32.mrb[1].mxu1 }
 0x288   : > { %v2034_v36 = vcombine.low %v2010_v58, %v2012_v59  ;;  %v2014_v55 = vpop.f32.mrb[2].mxu1 }
 0x289   : > { %v2015_v62 = vpop.f32.mrb[3].mxu1 }
 0x28a   : > { %2038 = vst [vmem:[%s179_s7 + $0x8] sm:$0xff] %v2034_v36 }
 0x28b PF: > { %s12_s13 = sadd.s32 1, %s2405_s13   ;;  %s3156_s9 = smov %s2397_s11 }
 0x28c   : > { %p9_p8 = scmp.ge.s32.totalorder %s12_s13, 8   ;;  %s3157_s10 = smov %s2401_s12 }
 0x28d   : > { %s3158_s11 = smov %s3161_s14  ;;  %s3159_s12 = smov %s3165_s15 }
 0x28e   :  { %11 = sbr.rel (!%p9_p8) target bundleno = 3 (0x3), region = 66 }

</bundles_post_ra>
